<compile_context>
chip_gen: v7x
topology: tpu7x:2x2x1
jax: 0.10.0
libtpu: 0.0.40
codegen_flags: <defaults>
</compile_context>

<pallas_src>
import functools

import jax
import jax.numpy as jnp
from jax.experimental import pallas as pl
from jax.experimental.pallas import tpu as pltpu


def _conv3x3_relu_kernel(x_ref, w_ref, b_ref, o_ref, xpad_ref, *,
                         B, H, W, Wp, L, KH, KW, pad):
    """Fused pad + im2col + 3x3 'same' conv + bias + ReLU for B images.

    x_ref:    (B, Cin, H, W)      unpadded input block               (VMEM)
    w_ref:    (Cout, KH*KW*Cin)   folded conv weights (K = 36)       (VMEM)
    b_ref:    (Cout, 1)           bias column                        (VMEM)
    o_ref:    (B, Cout, H*W)      compact lane-dense output          (VMEM)
    xpad_ref: (B, Cin, PADLEN)    zero-halo padded slab              (VMEM scratch)
    """
    # Zero the slab every step (few KB — negligible) so the halo is guaranteed
    # zero regardless of how grid steps are split across TensorCores.
    xpad_ref[...] = jnp.zeros_like(xpad_ref)

    # Fused halo padding: copy the H image rows into the slab interior.
    for h in range(H):
        row_off = (h + pad) * Wp + pad
        xpad_ref[:, :, row_off:row_off + W] = (
            x_ref[:, :, h, :].astype(xpad_ref.dtype))

    offsets = [dy * Wp + dx for dy in range(KH) for dx in range(KW)]
    for b in range(B):
        xp = xpad_ref[b]                                       # (Cin, PADLEN)
        # im2col: 9 shifted views stacked once -> (KH*KW*Cin, L); one K=36
        # MXU matmul with f32 accumulation replaces 9 K=4 matmuls + VPU adds.
        rhs = jnp.concatenate([xp[:, off:off + L] for off in offsets], axis=0)
        acc = jnp.dot(w_ref[...], rhs, preferred_element_type=jnp.float32)
        y = jnp.maximum(acc + b_ref[...], 0.0)                 # (Cout, L) f32
        # Fused trim: copy the W valid lanes of each of the H rows of the
        # padded-width layout into the compact (Cout, H*W) output block.
        for h in range(H):
            o_ref[b, :, h * W:(h + 1) * W] = (
                y[:, h * Wp:h * Wp + W].astype(o_ref.dtype))


def _pick_padded_width(H, W, pad):
    """Smallest row stride >= W + 2*pad making L = H*Wp a multiple of 128."""
    w_min = W + 2 * pad
    for wp in range(w_min, w_min + 128):
        if (H * wp) % 128 == 0:
            return wp
    return w_min


def _pick_batch_tile(N, bytes_per_image, target_bytes=512 * 1024):
    """Images per grid step: amortize the ~0.35us per-step pipeline overhead,
    but keep >= 2 grid steps (two v7x TensorCores) and B | N (no tail block)."""
    B = int(max(1, min(N, target_bytes // max(bytes_per_image, 1))))
    while B > 1 and (pl.cdiv(N, B) < 2 or N % B != 0):
        B -= 1
    return B


def wrapped_model_forward(x_nchw, weight_oihw, bias_o, *,
                          compute_dtype=jnp.float32):
    """Equivalent of WrappedModel(Conv2d(4,8,3,pad=1) + ReLU)(x).

    x_nchw:      (N, Cin, H, W)    float32 (PyTorch NCHW)
    weight_oihw: (Cout, Cin, 3, 3) float32 (PyTorch conv weight layout)
    bias_o:      (Cout,)           float32
    returns:     (N, Cout, H, W)   float32
    """
    N, Cin, H, W = x_nchw.shape
    Cout, Cin_w, KH, KW = weight_oihw.shape
    assert Cin_w == Cin and KH == 3 and KW == 3
    pad = KH // 2

    Wp = _pick_padded_width(H, W, pad)        # lane-aligned row stride
    L = H * Wp                                # per-image matmul N dim (mult of 128)
    # One extra bottom row keeps every shifted slice [off, off+L),
    # off <= (KH-1)*Wp + (KW-1), inside the slab.  Load-bearing: keep asserted.
    PADLEN = (H + 2 * pad + 1) * Wp
    assert PADLEN >= (KH - 1) * Wp + (KW - 1) + L

    itemsize = jnp.dtype(compute_dtype).itemsize
    per_img = (Cin * H * W * x_nchw.dtype.itemsize      # input block
               + Cout * H * W * 4                       # output block
               + Cin * PADLEN * itemsize)               # padded slab
    B = _pick_batch_tile(N, per_img)
    grid = (N // B,)

    # (Cout, Cin, ky, kx) -> (Cout, ky*kx*Cin): tap-major / cin-minor columns,
    # matching the stacked im2col RHS built in the kernel.
    K_fold = KH * KW * Cin
    w_fold = jnp.transpose(weight_oihw, (0, 2, 3, 1)).reshape(Cout, K_fold)
    w_fold = w_fold.astype(compute_dtype)
    b_col = bias_o.reshape(Cout, 1).astype(jnp.float32)

    cost = pl.CostEstimate(
        flops=2 * N * Cout * K_fold * L,
        transcendentals=0,
        bytes_accessed=(x_nchw.size * x_nchw.dtype.itemsize
                        + w_fold.size * itemsize + b_col.size * 4
                        + N * Cout * H * W * 4),
    )

    kernel = functools.partial(_conv3x3_relu_kernel, B=B, H=H, W=W, Wp=Wp,
                               L=L, KH=KH, KW=KW, pad=pad)

    out_flat = pl.pallas_call(
        kernel,
        out_shape=jax.ShapeDtypeStruct((N, Cout, H * W), jnp.float32),
        grid=grid,
        in_specs=[
            pl.BlockSpec((B, Cin, H, W), lambda n: (n, 0, 0, 0)),
            pl.BlockSpec((Cout, K_fold), lambda n: (0, 0)),
            pl.BlockSpec((Cout, 1), lambda n: (0, 0)),
        ],
        out_specs=pl.BlockSpec((B, Cout, H * W), lambda n: (n, 0, 0)),
        scratch_shapes=[pltpu.VMEM((B, Cin, PADLEN), compute_dtype)],
        compiler_params=pltpu.CompilerParams(
            dimension_semantics=("parallel",)),
        cost_estimate=cost,
    )(x_nchw, w_fold, b_col)

    # Compact (N, Cout, H*W) -> NCHW: contiguous reshape, no HBM pass.
    return out_flat.reshape(N, Cout, H, W)


if __name__ == "__main__":
    # Deterministic parameters + input (synthetic; no checkpoint load).
    key = jax.random.PRNGKey(0)
    k_x, k_w, k_b = jax.random.split(key, 3)

    N, Cin, H, W = 2, 4, 16, 16
    Cout, KH, KW = 8, 3, 3

    x = jax.random.normal(k_x, (N, Cin, H, W), dtype=jnp.float32)
    weight = jax.random.normal(k_w, (Cout, Cin, KH, KW), dtype=jnp.float32) * 0.1
    bias = jax.random.normal(k_b, (Cout,), dtype=jnp.float32) * 0.1

    out = jax.block_until_ready(wrapped_model_forward(x, weight, bias))

    # Reference: XLA conv + bias + ReLU.
    ref = jax.lax.conv_general_dilated(
        x, weight, window_strides=(1, 1), padding="SAME",
        dimension_numbers=("NCHW", "OIHW", "NCHW"))
    ref = jnp.maximum(ref + bias[None, :, None, None], 0.0)
    assert out.shape == (N, Cout, H, W)
    assert float(jnp.max(jnp.abs(out - ref))) < 1e-4

    # bf16-operand path (v6e/v7x bandwidth win), f32 MXU accumulation.
    out_bf16 = jax.block_until_ready(
        wrapped_model_forward(x, weight, bias, compute_dtype=jnp.bfloat16))
    assert float(jnp.max(jnp.abs(out_bf16 - ref))) < 5e-2

    print("KERNEL_OK")
</pallas_src>

<mosaic_0001>
module attributes {stable_mosaic.version = 11 : i64} {
  func.func @_conv3x3_relu_kernel(%arg0: i32, %arg1: memref<1x4x16x16xf32, #tpu.memory_space<vmem>>, %arg2: memref<8x36xf32, #tpu.memory_space<vmem>>, %arg3: memref<8x1xf32, #tpu.memory_space<vmem>>, %arg4: memref<1x8x256xf32, #tpu.memory_space<vmem>>, %arg5: memref<1x4x456xf32, #tpu.memory_space<vmem>>) attributes {dimension_semantics = [#tpu.dimension_semantics<parallel>], iteration_bounds = array<i64: 2>, scalar_prefetch = 0 : i64, scratch_operands = 1 : i64, tpu.core_type = #tpu.core_type<tc>, window_params = [{transform_indices = @transform_0, window_bounds = array<i64: 1, 4, 16, 16>}, {pipeline_mode = #tpu.pipeline_mode<synchronous>, transform_indices = @transform_1, window_bounds = array<i64: 8, 36>}, {pipeline_mode = #tpu.pipeline_mode<synchronous>, transform_indices = @transform_2, window_bounds = array<i64: 8, 1>}, {transform_indices = @transform_3, window_bounds = array<i64: 1, 8, 256>}]} {
    %cst = arith.constant 0.000000e+00 : f32
    %0 = vector.broadcast %cst : f32 to vector<1x4x456xf32>
    %c0 = arith.constant 0 : index
    %c0_0 = arith.constant 0 : index
    %c0_1 = arith.constant 0 : index
    %1 = vector.load %arg5[%c0, %c0_0, %c0_1] : memref<1x4x456xf32, #tpu.memory_space<vmem>>, vector<1x4x456xf32>
    tpu.vector_store %arg5[%c0, %c0_0, %c0_1], %0 {strides = array<i32>} : memref<1x4x456xf32, #tpu.memory_space<vmem>>, vector<1x4x456xf32>,
    %c0_2 = arith.constant 0 : index
    %c0_3 = arith.constant 0 : index
    %c0_4 = arith.constant 0 : index
    %c0_5 = arith.constant 0 : index
    %2 = vector.load %arg1[%c0_2, %c0_3, %c0_4, %c0_5] : memref<1x4x16x16xf32, #tpu.memory_space<vmem>>, vector<1x4x1x16xf32>
    %3 = vector.shape_cast %2 : vector<1x4x1x16xf32> to vector<1x4x16xf32>
    %c0_6 = arith.constant 0 : index
    %c0_7 = arith.constant 0 : index
    %c25 = arith.constant 25 : index
    %4 = vector.load %arg5[%c0_6, %c0_7, %c25] : memref<1x4x456xf32, #tpu.memory_space<vmem>>, vector<1x4x16xf32>
    tpu.vector_store %arg5[%c0_6, %c0_7, %c25], %3 {strides = array<i32>} : memref<1x4x456xf32, #tpu.memory_space<vmem>>, vector<1x4x16xf32>,
    %c0_8 = arith.constant 0 : index
    %c0_9 = arith.constant 0 : index
    %c1 = arith.constant 1 : index
    %c0_10 = arith.constant 0 : index
    %5 = vector.load %arg1[%c0_8, %c0_9, %c1, %c0_10] : memref<1x4x16x16xf32, #tpu.memory_space<vmem>>, vector<1x4x1x16xf32>
    %6 = vector.shape_cast %5 : vector<1x4x1x16xf32> to vector<1x4x16xf32>
    %c0_11 = arith.constant 0 : index
    %c0_12 = arith.constant 0 : index
    %c49 = arith.constant 49 : index
    %7 = vector.load %arg5[%c0_11, %c0_12, %c49] : memref<1x4x456xf32, #tpu.memory_space<vmem>>, vector<1x4x16xf32>
    tpu.vector_store %arg5[%c0_11, %c0_12, %c49], %6 {strides = array<i32>} : memref<1x4x456xf32, #tpu.memory_space<vmem>>, vector<1x4x16xf32>,
    %c0_13 = arith.constant 0 : index
    %c0_14 = arith.constant 0 : index
    %c2 = arith.constant 2 : index
    %c0_15 = arith.constant 0 : index
    %8 = vector.load %arg1[%c0_13, %c0_14, %c2, %c0_15] : memref<1x4x16x16xf32, #tpu.memory_space<vmem>>, vector<1x4x1x16xf32>
    %9 = vector.shape_cast %8 : vector<1x4x1x16xf32> to vector<1x4x16xf32>
    %c0_16 = arith.constant 0 : index
    %c0_17 = arith.constant 0 : index
    %c73 = arith.constant 73 : index
    %10 = vector.load %arg5[%c0_16, %c0_17, %c73] : memref<1x4x456xf32, #tpu.memory_space<vmem>>, vector<1x4x16xf32>
    tpu.vector_store %arg5[%c0_16, %c0_17, %c73], %9 {strides = array<i32>} : memref<1x4x456xf32, #tpu.memory_space<vmem>>, vector<1x4x16xf32>,
    %c0_18 = arith.constant 0 : index
    %c0_19 = arith.constant 0 : index
    %c3 = arith.constant 3 : index
    %c0_20 = arith.constant 0 : index
    %11 = vector.load %arg1[%c0_18, %c0_19, %c3, %c0_20] : memref<1x4x16x16xf32, #tpu.memory_space<vmem>>, vector<1x4x1x16xf32>
    %12 = vector.shape_cast %11 : vector<1x4x1x16xf32> to vector<1x4x16xf32>
    %c0_21 = arith.constant 0 : index
    %c0_22 = arith.constant 0 : index
    %c97 = arith.constant 97 : index
    %13 = vector.load %arg5[%c0_21, %c0_22, %c97] : memref<1x4x456xf32, #tpu.memory_space<vmem>>, vector<1x4x16xf32>
    tpu.vector_store %arg5[%c0_21, %c0_22, %c97], %12 {strides = array<i32>} : memref<1x4x456xf32, #tpu.memory_space<vmem>>, vector<1x4x16xf32>,
    %c0_23 = arith.constant 0 : index
    %c0_24 = arith.constant 0 : index
    %c4 = arith.constant 4 : index
    %c0_25 = arith.constant 0 : index
    %14 = vector.load %arg1[%c0_23, %c0_24, %c4, %c0_25] : memref<1x4x16x16xf32, #tpu.memory_space<vmem>>, vector<1x4x1x16xf32>
    %15 = vector.shape_cast %14 : vector<1x4x1x16xf32> to vector<1x4x16xf32>
    %c0_26 = arith.constant 0 : index
    %c0_27 = arith.constant 0 : index
    %c121 = arith.constant 121 : index
    %16 = vector.load %arg5[%c0_26, %c0_27, %c121] : memref<1x4x456xf32, #tpu.memory_space<vmem>>, vector<1x4x16xf32>
    tpu.vector_store %arg5[%c0_26, %c0_27, %c121], %15 {strides = array<i32>} : memref<1x4x456xf32, #tpu.memory_space<vmem>>, vector<1x4x16xf32>,
    %c0_28 = arith.constant 0 : index
    %c0_29 = arith.constant 0 : index
    %c5 = arith.constant 5 : index
    %c0_30 = arith.constant 0 : index
    %17 = vector.load %arg1[%c0_28, %c0_29, %c5, %c0_30] : memref<1x4x16x16xf32, #tpu.memory_space<vmem>>, vector<1x4x1x16xf32>
    %18 = vector.shape_cast %17 : vector<1x4x1x16xf32> to vector<1x4x16xf32>
    %c0_31 = arith.constant 0 : index
    %c0_32 = arith.constant 0 : index
    %c145 = arith.constant 145 : index
    %19 = vector.load %arg5[%c0_31, %c0_32, %c145] : memref<1x4x456xf32, #tpu.memory_space<vmem>>, vector<1x4x16xf32>
    tpu.vector_store %arg5[%c0_31, %c0_32, %c145], %18 {strides = array<i32>} : memref<1x4x456xf32, #tpu.memory_space<vmem>>, vector<1x4x16xf32>,
    %c0_33 = arith.constant 0 : index
    %c0_34 = arith.constant 0 : index
    %c6 = arith.constant 6 : index
    %c0_35 = arith.constant 0 : index
    %20 = vector.load %arg1[%c0_33, %c0_34, %c6, %c0_35] : memref<1x4x16x16xf32, #tpu.memory_space<vmem>>, vector<1x4x1x16xf32>
    %21 = vector.shape_cast %20 : vector<1x4x1x16xf32> to vector<1x4x16xf32>
    %c0_36 = arith.constant 0 : index
    %c0_37 = arith.constant 0 : index
    %c169 = arith.constant 169 : index
    %22 = vector.load %arg5[%c0_36, %c0_37, %c169] : memref<1x4x456xf32, #tpu.memory_space<vmem>>, vector<1x4x16xf32>
    tpu.vector_store %arg5[%c0_36, %c0_37, %c169], %21 {strides = array<i32>} : memref<1x4x456xf32, #tpu.memory_space<vmem>>, vector<1x4x16xf32>,
    %c0_38 = arith.constant 0 : index
    %c0_39 = arith.constant 0 : index
    %c7 = arith.constant 7 : index
    %c0_40 = arith.constant 0 : index
    %23 = vector.load %arg1[%c0_38, %c0_39, %c7, %c0_40] : memref<1x4x16x16xf32, #tpu.memory_space<vmem>>, vector<1x4x1x16xf32>
    %24 = vector.shape_cast %23 : vector<1x4x1x16xf32> to vector<1x4x16xf32>
    %c0_41 = arith.constant 0 : index
    %c0_42 = arith.constant 0 : index
    %c193 = arith.constant 193 : index
    %25 = vector.load %arg5[%c0_41, %c0_42, %c193] : memref<1x4x456xf32, #tpu.memory_space<vmem>>, vector<1x4x16xf32>
    tpu.vector_store %arg5[%c0_41, %c0_42, %c193], %24 {strides = array<i32>} : memref<1x4x456xf32, #tpu.memory_space<vmem>>, vector<1x4x16xf32>,
    %c0_43 = arith.constant 0 : index
    %c0_44 = arith.constant 0 : index
    %c8 = arith.constant 8 : index
    %c0_45 = arith.constant 0 : index
    %26 = vector.load %arg1[%c0_43, %c0_44, %c8, %c0_45] : memref<1x4x16x16xf32, #tpu.memory_space<vmem>>, vector<1x4x1x16xf32>
    %27 = vector.shape_cast %26 : vector<1x4x1x16xf32> to vector<1x4x16xf32>
    %c0_46 = arith.constant 0 : index
    %c0_47 = arith.constant 0 : index
    %c217 = arith.constant 217 : index
    %28 = vector.load %arg5[%c0_46, %c0_47, %c217] : memref<1x4x456xf32, #tpu.memory_space<vmem>>, vector<1x4x16xf32>
    tpu.vector_store %arg5[%c0_46, %c0_47, %c217], %27 {strides = array<i32>} : memref<1x4x456xf32, #tpu.memory_space<vmem>>, vector<1x4x16xf32>,
    %c0_48 = arith.constant 0 : index
    %c0_49 = arith.constant 0 : index
    %c9 = arith.constant 9 : index
    %c0_50 = arith.constant 0 : index
    %29 = vector.load %arg1[%c0_48, %c0_49, %c9, %c0_50] : memref<1x4x16x16xf32, #tpu.memory_space<vmem>>, vector<1x4x1x16xf32>
    %30 = vector.shape_cast %29 : vector<1x4x1x16xf32> to vector<1x4x16xf32>
    %c0_51 = arith.constant 0 : index
    %c0_52 = arith.constant 0 : index
    %c241 = arith.constant 241 : index
    %31 = vector.load %arg5[%c0_51, %c0_52, %c241] : memref<1x4x456xf32, #tpu.memory_space<vmem>>, vector<1x4x16xf32>
    tpu.vector_store %arg5[%c0_51, %c0_52, %c241], %30 {strides = array<i32>} : memref<1x4x456xf32, #tpu.memory_space<vmem>>, vector<1x4x16xf32>,
    %c0_53 = arith.constant 0 : index
    %c0_54 = arith.constant 0 : index
    %c10 = arith.constant 10 : index
    %c0_55 = arith.constant 0 : index
    %32 = vector.load %arg1[%c0_53, %c0_54, %c10, %c0_55] : memref<1x4x16x16xf32, #tpu.memory_space<vmem>>, vector<1x4x1x16xf32>
    %33 = vector.shape_cast %32 : vector<1x4x1x16xf32> to vector<1x4x16xf32>
    %c0_56 = arith.constant 0 : index
    %c0_57 = arith.constant 0 : index
    %c265 = arith.constant 265 : index
    %34 = vector.load %arg5[%c0_56, %c0_57, %c265] : memref<1x4x456xf32, #tpu.memory_space<vmem>>, vector<1x4x16xf32>
    tpu.vector_store %arg5[%c0_56, %c0_57, %c265], %33 {strides = array<i32>} : memref<1x4x456xf32, #tpu.memory_space<vmem>>, vector<1x4x16xf32>,
    %c0_58 = arith.constant 0 : index
    %c0_59 = arith.constant 0 : index
    %c11 = arith.constant 11 : index
    %c0_60 = arith.constant 0 : index
    %35 = vector.load %arg1[%c0_58, %c0_59, %c11, %c0_60] : memref<1x4x16x16xf32, #tpu.memory_space<vmem>>, vector<1x4x1x16xf32>
    %36 = vector.shape_cast %35 : vector<1x4x1x16xf32> to vector<1x4x16xf32>
    %c0_61 = arith.constant 0 : index
    %c0_62 = arith.constant 0 : index
    %c289 = arith.constant 289 : index
    %37 = vector.load %arg5[%c0_61, %c0_62, %c289] : memref<1x4x456xf32, #tpu.memory_space<vmem>>, vector<1x4x16xf32>
    tpu.vector_store %arg5[%c0_61, %c0_62, %c289], %36 {strides = array<i32>} : memref<1x4x456xf32, #tpu.memory_space<vmem>>, vector<1x4x16xf32>,
    %c0_63 = arith.constant 0 : index
    %c0_64 = arith.constant 0 : index
    %c12 = arith.constant 12 : index
    %c0_65 = arith.constant 0 : index
    %38 = vector.load %arg1[%c0_63, %c0_64, %c12, %c0_65] : memref<1x4x16x16xf32, #tpu.memory_space<vmem>>, vector<1x4x1x16xf32>
    %39 = vector.shape_cast %38 : vector<1x4x1x16xf32> to vector<1x4x16xf32>
    %c0_66 = arith.constant 0 : index
    %c0_67 = arith.constant 0 : index
    %c313 = arith.constant 313 : index
    %40 = vector.load %arg5[%c0_66, %c0_67, %c313] : memref<1x4x456xf32, #tpu.memory_space<vmem>>, vector<1x4x16xf32>
    tpu.vector_store %arg5[%c0_66, %c0_67, %c313], %39 {strides = array<i32>} : memref<1x4x456xf32, #tpu.memory_space<vmem>>, vector<1x4x16xf32>,
    %c0_68 = arith.constant 0 : index
    %c0_69 = arith.constant 0 : index
    %c13 = arith.constant 13 : index
    %c0_70 = arith.constant 0 : index
    %41 = vector.load %arg1[%c0_68, %c0_69, %c13, %c0_70] : memref<1x4x16x16xf32, #tpu.memory_space<vmem>>, vector<1x4x1x16xf32>
    %42 = vector.shape_cast %41 : vector<1x4x1x16xf32> to vector<1x4x16xf32>
    %c0_71 = arith.constant 0 : index
    %c0_72 = arith.constant 0 : index
    %c337 = arith.constant 337 : index
    %43 = vector.load %arg5[%c0_71, %c0_72, %c337] : memref<1x4x456xf32, #tpu.memory_space<vmem>>, vector<1x4x16xf32>
    tpu.vector_store %arg5[%c0_71, %c0_72, %c337], %42 {strides = array<i32>} : memref<1x4x456xf32, #tpu.memory_space<vmem>>, vector<1x4x16xf32>,
    %c0_73 = arith.constant 0 : index
    %c0_74 = arith.constant 0 : index
    %c14 = arith.constant 14 : index
    %c0_75 = arith.constant 0 : index
    %44 = vector.load %arg1[%c0_73, %c0_74, %c14, %c0_75] : memref<1x4x16x16xf32, #tpu.memory_space<vmem>>, vector<1x4x1x16xf32>
    %45 = vector.shape_cast %44 : vector<1x4x1x16xf32> to vector<1x4x16xf32>
    %c0_76 = arith.constant 0 : index
    %c0_77 = arith.constant 0 : index
    %c361 = arith.constant 361 : index
    %46 = vector.load %arg5[%c0_76, %c0_77, %c361] : memref<1x4x456xf32, #tpu.memory_space<vmem>>, vector<1x4x16xf32>
    tpu.vector_store %arg5[%c0_76, %c0_77, %c361], %45 {strides = array<i32>} : memref<1x4x456xf32, #tpu.memory_space<vmem>>, vector<1x4x16xf32>,
    %c0_78 = arith.constant 0 : index
    %c0_79 = arith.constant 0 : index
    %c15 = arith.constant 15 : index
    %c0_80 = arith.constant 0 : index
    %47 = vector.load %arg1[%c0_78, %c0_79, %c15, %c0_80] : memref<1x4x16x16xf32, #tpu.memory_space<vmem>>, vector<1x4x1x16xf32>
    %48 = vector.shape_cast %47 : vector<1x4x1x16xf32> to vector<1x4x16xf32>
    %c0_81 = arith.constant 0 : index
    %c0_82 = arith.constant 0 : index
    %c385 = arith.constant 385 : index
    %49 = vector.load %arg5[%c0_81, %c0_82, %c385] : memref<1x4x456xf32, #tpu.memory_space<vmem>>, vector<1x4x16xf32>
    tpu.vector_store %arg5[%c0_81, %c0_82, %c385], %48 {strides = array<i32>} : memref<1x4x456xf32, #tpu.memory_space<vmem>>, vector<1x4x16xf32>,
    %c0_83 = arith.constant 0 : index
    %c0_84 = arith.constant 0 : index
    %c0_85 = arith.constant 0 : index
    %50 = vector.load %arg5[%c0_83, %c0_84, %c0_85] : memref<1x4x456xf32, #tpu.memory_space<vmem>>, vector<1x4x456xf32>
    %51 = vector.shape_cast %50 : vector<1x4x456xf32> to vector<4x456xf32>
    %52 = vector.extract_strided_slice %51 {offsets = [0, 0], sizes = [4, 384], strides = [1, 1]} : vector<4x456xf32> to vector<4x384xf32>
    %53 = vector.extract_strided_slice %51 {offsets = [0, 1], sizes = [4, 384], strides = [1, 1]} : vector<4x456xf32> to vector<4x384xf32>
    %54 = vector.extract_strided_slice %51 {offsets = [0, 2], sizes = [4, 384], strides = [1, 1]} : vector<4x456xf32> to vector<4x384xf32>
    %55 = vector.extract_strided_slice %51 {offsets = [0, 24], sizes = [4, 384], strides = [1, 1]} : vector<4x456xf32> to vector<4x384xf32>
    %56 = vector.extract_strided_slice %51 {offsets = [0, 25], sizes = [4, 384], strides = [1, 1]} : vector<4x456xf32> to vector<4x384xf32>
    %57 = vector.extract_strided_slice %51 {offsets = [0, 26], sizes = [4, 384], strides = [1, 1]} : vector<4x456xf32> to vector<4x384xf32>
    %58 = vector.extract_strided_slice %51 {offsets = [0, 48], sizes = [4, 384], strides = [1, 1]} : vector<4x456xf32> to vector<4x384xf32>
    %59 = vector.extract_strided_slice %51 {offsets = [0, 49], sizes = [4, 384], strides = [1, 1]} : vector<4x456xf32> to vector<4x384xf32>
    %60 = vector.extract_strided_slice %51 {offsets = [0, 50], sizes = [4, 384], strides = [1, 1]} : vector<4x456xf32> to vector<4x384xf32>
    %61 = tpu.concatenate %52, %53, %54, %55, %56, %57, %58, %59, %60 in 0 : vector<4x384xf32>, vector<4x384xf32>, vector<4x384xf32>, vector<4x384xf32>, vector<4x384xf32>, vector<4x384xf32>, vector<4x384xf32>, vector<4x384xf32>, vector<4x384xf32> -> vector<36x384xf32>
    %c0_86 = arith.constant 0 : index
    %c0_87 = arith.constant 0 : index
    %62 = vector.load %arg2[%c0_86, %c0_87] : memref<8x36xf32, #tpu.memory_space<vmem>>, vector<8x36xf32>
    %cst_88 = arith.constant dense<0.000000e+00> : vector<8x384xf32>
    %63 = tpu.matmul %62, %61, %cst_88 {dimension_numbers = #tpu.dot_dimension_numbers<[1], [0], [0], [1], [0, 0, 1, 1], [], []>} : vector<8x36xf32>, vector<36x384xf32>, vector<8x384xf32> -> vector<8x384xf32>
    %c0_89 = arith.constant 0 : index
    %c0_90 = arith.constant 0 : index
    %64 = vector.load %arg3[%c0_89, %c0_90] : memref<8x1xf32, #tpu.memory_space<vmem>>, vector<8x1xf32>
    %65 = vector.broadcast %64 : vector<8x1xf32> to vector<8x384xf32>
    %66 = arith.addf %63, %65 : vector<8x384xf32>
    %cst_91 = arith.constant 0.000000e+00 : f32
    %67 = vector.broadcast %cst_91 : f32 to vector<8x384xf32>
    %68 = arith.maximumf %66, %67 : vector<8x384xf32>
    %69 = vector.extract_strided_slice %68 {offsets = [0, 0], sizes = [8, 16], strides = [1, 1]} : vector<8x384xf32> to vector<8x16xf32>
    %c0_92 = arith.constant 0 : index
    %c0_93 = arith.constant 0 : index
    %c0_94 = arith.constant 0 : index
    %70 = vector.load %arg4[%c0_92, %c0_93, %c0_94] : memref<1x8x256xf32, #tpu.memory_space<vmem>>, vector<1x8x16xf32>
    %71 = vector.shape_cast %70 : vector<1x8x16xf32> to vector<8x16xf32>
    %72 = vector.shape_cast %69 : vector<8x16xf32> to vector<1x8x16xf32>
    tpu.vector_store %arg4[%c0_92, %c0_93, %c0_94], %72 {strides = array<i32>} : memref<1x8x256xf32, #tpu.memory_space<vmem>>, vector<1x8x16xf32>,
    %73 = vector.extract_strided_slice %68 {offsets = [0, 24], sizes = [8, 16], strides = [1, 1]} : vector<8x384xf32> to vector<8x16xf32>
    %c0_95 = arith.constant 0 : index
    %c0_96 = arith.constant 0 : index
    %c16 = arith.constant 16 : index
    %74 = vector.load %arg4[%c0_95, %c0_96, %c16] : memref<1x8x256xf32, #tpu.memory_space<vmem>>, vector<1x8x16xf32>
    %75 = vector.shape_cast %74 : vector<1x8x16xf32> to vector<8x16xf32>
    %76 = vector.shape_cast %73 : vector<8x16xf32> to vector<1x8x16xf32>
    tpu.vector_store %arg4[%c0_95, %c0_96, %c16], %76 {strides = array<i32>} : memref<1x8x256xf32, #tpu.memory_space<vmem>>, vector<1x8x16xf32>,
    %77 = vector.extract_strided_slice %68 {offsets = [0, 48], sizes = [8, 16], strides = [1, 1]} : vector<8x384xf32> to vector<8x16xf32>
    %c0_97 = arith.constant 0 : index
    %c0_98 = arith.constant 0 : index
    %c32 = arith.constant 32 : index
    %78 = vector.load %arg4[%c0_97, %c0_98, %c32] : memref<1x8x256xf32, #tpu.memory_space<vmem>>, vector<1x8x16xf32>
    %79 = vector.shape_cast %78 : vector<1x8x16xf32> to vector<8x16xf32>
    %80 = vector.shape_cast %77 : vector<8x16xf32> to vector<1x8x16xf32>
    tpu.vector_store %arg4[%c0_97, %c0_98, %c32], %80 {strides = array<i32>} : memref<1x8x256xf32, #tpu.memory_space<vmem>>, vector<1x8x16xf32>,
    %81 = vector.extract_strided_slice %68 {offsets = [0, 72], sizes = [8, 16], strides = [1, 1]} : vector<8x384xf32> to vector<8x16xf32>
    %c0_99 = arith.constant 0 : index
    %c0_100 = arith.constant 0 : index
    %c48 = arith.constant 48 : index
    %82 = vector.load %arg4[%c0_99, %c0_100, %c48] : memref<1x8x256xf32, #tpu.memory_space<vmem>>, vector<1x8x16xf32>
    %83 = vector.shape_cast %82 : vector<1x8x16xf32> to vector<8x16xf32>
    %84 = vector.shape_cast %81 : vector<8x16xf32> to vector<1x8x16xf32>
    tpu.vector_store %arg4[%c0_99, %c0_100, %c48], %84 {strides = array<i32>} : memref<1x8x256xf32, #tpu.memory_space<vmem>>, vector<1x8x16xf32>,
    %85 = vector.extract_strided_slice %68 {offsets = [0, 96], sizes = [8, 16], strides = [1, 1]} : vector<8x384xf32> to vector<8x16xf32>
    %c0_101 = arith.constant 0 : index
    %c0_102 = arith.constant 0 : index
    %c64 = arith.constant 64 : index
    %86 = vector.load %arg4[%c0_101, %c0_102, %c64] : memref<1x8x256xf32, #tpu.memory_space<vmem>>, vector<1x8x16xf32>
    %87 = vector.shape_cast %86 : vector<1x8x16xf32> to vector<8x16xf32>
    %88 = vector.shape_cast %85 : vector<8x16xf32> to vector<1x8x16xf32>
    tpu.vector_store %arg4[%c0_101, %c0_102, %c64], %88 {strides = array<i32>} : memref<1x8x256xf32, #tpu.memory_space<vmem>>, vector<1x8x16xf32>,
    %89 = vector.extract_strided_slice %68 {offsets = [0, 120], sizes = [8, 16], strides = [1, 1]} : vector<8x384xf32> to vector<8x16xf32>
    %c0_103 = arith.constant 0 : index
    %c0_104 = arith.constant 0 : index
    %c80 = arith.constant 80 : index
    %90 = vector.load %arg4[%c0_103, %c0_104, %c80] : memref<1x8x256xf32, #tpu.memory_space<vmem>>, vector<1x8x16xf32>
    %91 = vector.shape_cast %90 : vector<1x8x16xf32> to vector<8x16xf32>
    %92 = vector.shape_cast %89 : vector<8x16xf32> to vector<1x8x16xf32>
    tpu.vector_store %arg4[%c0_103, %c0_104, %c80], %92 {strides = array<i32>} : memref<1x8x256xf32, #tpu.memory_space<vmem>>, vector<1x8x16xf32>,
    %93 = vector.extract_strided_slice %68 {offsets = [0, 144], sizes = [8, 16], strides = [1, 1]} : vector<8x384xf32> to vector<8x16xf32>
    %c0_105 = arith.constant 0 : index
    %c0_106 = arith.constant 0 : index
    %c96 = arith.constant 96 : index
    %94 = vector.load %arg4[%c0_105, %c0_106, %c96] : memref<1x8x256xf32, #tpu.memory_space<vmem>>, vector<1x8x16xf32>
    %95 = vector.shape_cast %94 : vector<1x8x16xf32> to vector<8x16xf32>
    %96 = vector.shape_cast %93 : vector<8x16xf32> to vector<1x8x16xf32>
    tpu.vector_store %arg4[%c0_105, %c0_106, %c96], %96 {strides = array<i32>} : memref<1x8x256xf32, #tpu.memory_space<vmem>>, vector<1x8x16xf32>,
    %97 = vector.extract_strided_slice %68 {offsets = [0, 168], sizes = [8, 16], strides = [1, 1]} : vector<8x384xf32> to vector<8x16xf32>
    %c0_107 = arith.constant 0 : index
    %c0_108 = arith.constant 0 : index
    %c112 = arith.constant 112 : index
    %98 = vector.load %arg4[%c0_107, %c0_108, %c112] : memref<1x8x256xf32, #tpu.memory_space<vmem>>, vector<1x8x16xf32>
    %99 = vector.shape_cast %98 : vector<1x8x16xf32> to vector<8x16xf32>
    %100 = vector.shape_cast %97 : vector<8x16xf32> to vector<1x8x16xf32>
    tpu.vector_store %arg4[%c0_107, %c0_108, %c112], %100 {strides = array<i32>} : memref<1x8x256xf32, #tpu.memory_space<vmem>>, vector<1x8x16xf32>,
    %101 = vector.extract_strided_slice %68 {offsets = [0, 192], sizes = [8, 16], strides = [1, 1]} : vector<8x384xf32> to vector<8x16xf32>
    %c0_109 = arith.constant 0 : index
    %c0_110 = arith.constant 0 : index
    %c128 = arith.constant 128 : index
    %102 = vector.load %arg4[%c0_109, %c0_110, %c128] : memref<1x8x256xf32, #tpu.memory_space<vmem>>, vector<1x8x16xf32>
    %103 = vector.shape_cast %102 : vector<1x8x16xf32> to vector<8x16xf32>
    %104 = vector.shape_cast %101 : vector<8x16xf32> to vector<1x8x16xf32>
    tpu.vector_store %arg4[%c0_109, %c0_110, %c128], %104 {strides = array<i32>} : memref<1x8x256xf32, #tpu.memory_space<vmem>>, vector<1x8x16xf32>,
    %105 = vector.extract_strided_slice %68 {offsets = [0, 216], sizes = [8, 16], strides = [1, 1]} : vector<8x384xf32> to vector<8x16xf32>
    %c0_111 = arith.constant 0 : index
    %c0_112 = arith.constant 0 : index
    %c144 = arith.constant 144 : index
    %106 = vector.load %arg4[%c0_111, %c0_112, %c144] : memref<1x8x256xf32, #tpu.memory_space<vmem>>, vector<1x8x16xf32>
    %107 = vector.shape_cast %106 : vector<1x8x16xf32> to vector<8x16xf32>
    %108 = vector.shape_cast %105 : vector<8x16xf32> to vector<1x8x16xf32>
    tpu.vector_store %arg4[%c0_111, %c0_112, %c144], %108 {strides = array<i32>} : memref<1x8x256xf32, #tpu.memory_space<vmem>>, vector<1x8x16xf32>,
    %109 = vector.extract_strided_slice %68 {offsets = [0, 240], sizes = [8, 16], strides = [1, 1]} : vector<8x384xf32> to vector<8x16xf32>
    %c0_113 = arith.constant 0 : index
    %c0_114 = arith.constant 0 : index
    %c160 = arith.constant 160 : index
    %110 = vector.load %arg4[%c0_113, %c0_114, %c160] : memref<1x8x256xf32, #tpu.memory_space<vmem>>, vector<1x8x16xf32>
    %111 = vector.shape_cast %110 : vector<1x8x16xf32> to vector<8x16xf32>
    %112 = vector.shape_cast %109 : vector<8x16xf32> to vector<1x8x16xf32>
    tpu.vector_store %arg4[%c0_113, %c0_114, %c160], %112 {strides = array<i32>} : memref<1x8x256xf32, #tpu.memory_space<vmem>>, vector<1x8x16xf32>,
    %113 = vector.extract_strided_slice %68 {offsets = [0, 264], sizes = [8, 16], strides = [1, 1]} : vector<8x384xf32> to vector<8x16xf32>
    %c0_115 = arith.constant 0 : index
    %c0_116 = arith.constant 0 : index
    %c176 = arith.constant 176 : index
    %114 = vector.load %arg4[%c0_115, %c0_116, %c176] : memref<1x8x256xf32, #tpu.memory_space<vmem>>, vector<1x8x16xf32>
    %115 = vector.shape_cast %114 : vector<1x8x16xf32> to vector<8x16xf32>
    %116 = vector.shape_cast %113 : vector<8x16xf32> to vector<1x8x16xf32>
    tpu.vector_store %arg4[%c0_115, %c0_116, %c176], %116 {strides = array<i32>} : memref<1x8x256xf32, #tpu.memory_space<vmem>>, vector<1x8x16xf32>,
    %117 = vector.extract_strided_slice %68 {offsets = [0, 288], sizes = [8, 16], strides = [1, 1]} : vector<8x384xf32> to vector<8x16xf32>
    %c0_117 = arith.constant 0 : index
    %c0_118 = arith.constant 0 : index
    %c192 = arith.constant 192 : index
    %118 = vector.load %arg4[%c0_117, %c0_118, %c192] : memref<1x8x256xf32, #tpu.memory_space<vmem>>, vector<1x8x16xf32>
    %119 = vector.shape_cast %118 : vector<1x8x16xf32> to vector<8x16xf32>
    %120 = vector.shape_cast %117 : vector<8x16xf32> to vector<1x8x16xf32>
    tpu.vector_store %arg4[%c0_117, %c0_118, %c192], %120 {strides = array<i32>} : memref<1x8x256xf32, #tpu.memory_space<vmem>>, vector<1x8x16xf32>,
    %121 = vector.extract_strided_slice %68 {offsets = [0, 312], sizes = [8, 16], strides = [1, 1]} : vector<8x384xf32> to vector<8x16xf32>
    %c0_119 = arith.constant 0 : index
    %c0_120 = arith.constant 0 : index
    %c208 = arith.constant 208 : index
    %122 = vector.load %arg4[%c0_119, %c0_120, %c208] : memref<1x8x256xf32, #tpu.memory_space<vmem>>, vector<1x8x16xf32>
    %123 = vector.shape_cast %122 : vector<1x8x16xf32> to vector<8x16xf32>
    %124 = vector.shape_cast %121 : vector<8x16xf32> to vector<1x8x16xf32>
    tpu.vector_store %arg4[%c0_119, %c0_120, %c208], %124 {strides = array<i32>} : memref<1x8x256xf32, #tpu.memory_space<vmem>>, vector<1x8x16xf32>,
    %125 = vector.extract_strided_slice %68 {offsets = [0, 336], sizes = [8, 16], strides = [1, 1]} : vector<8x384xf32> to vector<8x16xf32>
    %c0_121 = arith.constant 0 : index
    %c0_122 = arith.constant 0 : index
    %c224 = arith.constant 224 : index
    %126 = vector.load %arg4[%c0_121, %c0_122, %c224] : memref<1x8x256xf32, #tpu.memory_space<vmem>>, vector<1x8x16xf32>
    %127 = vector.shape_cast %126 : vector<1x8x16xf32> to vector<8x16xf32>
    %128 = vector.shape_cast %125 : vector<8x16xf32> to vector<1x8x16xf32>
    tpu.vector_store %arg4[%c0_121, %c0_122, %c224], %128 {strides = array<i32>} : memref<1x8x256xf32, #tpu.memory_space<vmem>>, vector<1x8x16xf32>,
    %129 = vector.extract_strided_slice %68 {offsets = [0, 360], sizes = [8, 16], strides = [1, 1]} : vector<8x384xf32> to vector<8x16xf32>
    %c0_123 = arith.constant 0 : index
    %c0_124 = arith.constant 0 : index
    %c240 = arith.constant 240 : index
    %130 = vector.load %arg4[%c0_123, %c0_124, %c240] : memref<1x8x256xf32, #tpu.memory_space<vmem>>, vector<1x8x16xf32>
    %131 = vector.shape_cast %130 : vector<1x8x16xf32> to vector<8x16xf32>
    %132 = vector.shape_cast %129 : vector<8x16xf32> to vector<1x8x16xf32>
    tpu.vector_store %arg4[%c0_123, %c0_124, %c240], %132 {strides = array<i32>} : memref<1x8x256xf32, #tpu.memory_space<vmem>>, vector<1x8x16xf32>,
    return
  }
  func.func @transform_0(%arg0: i32) -> (i32, i32, i32, i32) {
    %c0_i32 = arith.constant 0 : i32
    %c0_i32_0 = arith.constant 0 : i32
    %c0_i32_1 = arith.constant 0 : i32
    %c0_i32_2 = arith.constant 0 : i32
    return %arg0, %c0_i32, %c0_i32_0, %c0_i32_1 : i32, i32, i32, i32
  }
  func.func @transform_1(%arg0: i32) -> (i32, i32) {
    %c0_i32 = arith.constant 0 : i32
    %c0_i32_0 = arith.constant 0 : i32
    %c0_i32_1 = arith.constant 0 : i32
    return %c0_i32, %c0_i32_0 : i32, i32
  }
  func.func @transform_2(%arg0: i32) -> (i32, i32) {
    %c0_i32 = arith.constant 0 : i32
    %c0_i32_0 = arith.constant 0 : i32
    %c0_i32_1 = arith.constant 0 : i32
    return %c0_i32, %c0_i32_0 : i32, i32
  }
  func.func @transform_3(%arg0: i32) -> (i32, i32, i32) {
    %c0_i32 = arith.constant 0 : i32
    %c0_i32_0 = arith.constant 0 : i32
    %c0_i32_1 = arith.constant 0 : i32
    return %arg0, %c0_i32, %c0_i32_0 : i32, i32, i32
  }
}

</mosaic_0001>

<bundles_post_ra>
// kernel: tpu_custom_call.1
= control target key start
LH: loop header
LB: loop body
LE: loop exit
PB: predicated region body
PF: predicated region fallthrough
CT: control target
= control target key end

     0   :  { %8 = vsyncpa [#allocation4], 0  ;;  %s1847_s0 = inlined_call_operand.hbm [shape: f32[2,4,16,16], index: 0, kind: input, shape index: {}]   ;;  %s1848_s1 = inlined_call_operand.vmem [shape: f32[8,36], index: 1, kind: input, shape index: {}]   ;;  %s1849_s2 = inlined_call_operand.vmem [shape: f32[8,1], index: 2, kind: input, shape index: {}]   ;;  %s1850_s3 = inlined_call_operand.hbm [shape: f32[2,8,256], index: 3, kind: output, shape index: {}]  }
   0x1   :  { %10 = vsyncpa [#allocation4 + $0x1], 0 }
   0x2   :  { %11 = vsyncpa [#allocation5], 0 }
   0x3   :  { %13 = vsyncpa [#allocation5 + $0x1], 0  ;;  %s1401_s12 = smov 0   ;;  %s1403_s13 = smov 0  }
   0x4   :  { %s1405_s14 = smov 0   ;;  %s1407_s15 = smov 0  }
   0x5 LB: > { %s1422_s16 = sadd.s32 4294967295, %s1334_s15   ;;  %s1022_s17 = sadd.s32 4294967294, %s1334_s15   ;;  %s1334_s15 = sphi %s1407_s15, %s1863_s15   ;;  %s1330_s14 = sphi %s1405_s14, %s1862_s14   ;;  %s1326_s13 = sphi %s1403_s13, %s1861_s13   ;;  %s1322_s12 = sphi %s1401_s12, %s1860_s12  }
   0x6   : > { %s1426_s18 = sadd.s32 1, %s1334_s15   ;;  %s26_s19 = sadd.s32 1, %s1330_s14 }
   0x7   : > { %s23_s20 = ssub.s32 %s1334_s15, %s1426_s18  ;;  %p33_p0 = scmp.ne.s32.totalorder %s1330_s14, %s1326_s13 }
   0x8   : > { %p24_p1 = scmp.eq.s32.totalorder %s23_s20, 0  ;;  %p34_p2 = scmp.eq.s32.totalorder %s1334_s15, 0 }
   0x9   : > { %p39_p3 = scmp.ne.s32.totalorder %s1326_s13, %s1322_s12  ;;  %p40_p4 = scmp.eq.s32.totalorder %s1422_s16, 0 }
   0xa   : > { %s1438_s21 = scalar_select %p24_p1, %s1330_s14, %s26_s19  }
   0xb   : > { %p1440_p5 = por %p34_p2, %p33_p0  ;;  %p1444_p6 = por %p40_p4, %p39_p3 }
   0xc   : > { %p105_p7 = scmp.eq.s32.totalorder %s1422_s16, 1  ;;  %p111_p8 = scmp.eq.s32.totalorder %s1022_s17, 1 }
   0xd   : > { %p1088_p10 = scmp.lt.s32.totalorder %s1334_s15, 2  ;;  %s137_s26 = sand.u32 1, %s1330_s14  }
   0xe   : > { %p1451_p11 = por %p105_p7, %p33_p0  ;;  %p1455_p12 = por %p111_p8, %p39_p3 }
   0xf   : > { %s1041_s27 = sshll.u32 %s1334_s15, 10  ;;  %s1025_s28 = sshll.u32 %s137_s26, 6 }
  0x10   : > { %s1854_s24 = scalar_select %p1451_p11, 1, 0 }
  0x11   : > { %s1855_s25 = scalar_select %p1455_p12, 1, 0 }
  0x12   : > { %s1464_s4 = scalar_lea.hbm %s1847_s0, %s1041_s27  ;;  %s141_s5 = scalar_lea.vmem [#allocation3], %s1025_s28 }
  0x13   : > { %s148_s6 = sshll.u32 %s141_s5, 4  ;;  %p1468_p13 = pnand %p1088_p10, %p1440_p5  ;;  %s1472_s6 = int_to_ptr.vmem [resolvable:$true] %s148_s6 }
  0x14   : > { %s1474_s8 = scalar_lea.sflag [#allocation4], %s137_s26  ;;  %s1238_s9 = scalar_lea.hbm %s1464_s4, 1024 }
  0x15   : > { %p1239_p0 = scmp.ne.s32.totalorder %s1464_s4, %s1238_s9  ;;  %p1240_p1 = pneg %p1468_p13 }
  0x16   : > { %s1243_s17 = scalar_lea.hbm %s1847_s0, 2048  ;;  %p1244_p4 = scmp.lt.u32.totalorder %s1464_s4, %s1847_s0 }
  0x17   : > { %p1241_p2 = pnand %p1240_p1, %p1239_p0  ;;  %p1245_p5 = scmp.lt.u32.totalorder %s1243_s17, %s1238_s9 }
  0x18   : > { %p1247_p8 = scmp.lt.u32.totalorder %s1238_s9, %s1464_s4 }
  0x19   : > { %p1242_p3 = pneg %p1241_p2  ;;  %p1246_p7 = por %p1245_p5, %p1244_p4 }
  0x1b   : > { %p1248_p10 = por %p1247_p8, %p1246_p7 }
  0x1d   : > { %p1249_p9 = pnand %p1248_p10, %p1242_p3 }
  0x1f   : > { %1252 = shalt.err (!%p1249_p9)
}
  0x20   : > { %s1253_s22 = scalar_lea.vmem %s1472_s6, 1024  ;;  %s1336_s26 = smov [#allocation3]  }
  0x21   : > { %p1254_p0 = scmp.ne.s32.totalorder %s1472_s6, %s1253_s22  ;;  %s1258_s27 = sshll.u32 %s1336_s26, 4  ;;  %s1259_s27 = int_to_ptr.vmem [resolvable:$false] %s1258_s27 }
  0x22   : > { %s1260_s28 = scalar_lea.vmem %s1259_s27, 2048  ;;  %p1261_p11 = scmp.lt.s32.totalorder %s1472_s6, %s1259_s27 }
  0x23   : > { %p1256_p2 = pnand %p1254_p0, %p1240_p1  ;;  %p1262_p4 = scmp.lt.s32.totalorder %s1260_s28, %s1253_s22 }
  0x25   : > { %p1257_p12 = pneg %p1256_p2  ;;  %p1263_p5 = por %p1262_p4, %p1261_p11 }
  0x27   : > { %p1264_p7 = pnand %p1263_p5, %p1257_p12 }
  0x29   : > { %1267 = shalt.err (!%p1264_p7)
}
  0x2a   : > { %s1337_s29 = smov 128   ;;  %s1338_s30 = smov 8  }
  0x2b   : > { %1083 = dma.hbm_to_vmem [thread:$0]  (!%p1468_p13), %s1464_s4, 1024, %s1472_s6, %s1474_s8, %s1337_s29, %s1337_s29, %s1338_s30  }
  0x2c   : > { %p1028_p9 = scmp.ge.s32.totalorder %s1334_s15, 1  ;;  %p156_p1 = scmp.lt.s32.totalorder %s1334_s15, 3 }
  0x2e   : > { %p157_p3 = pnand %p1028_p9, %p156_p1 }
  0x2f   : > { %s1505_s5 = sand.u32 (!%p157_p3), 1, %s1326_s13  }
  0x30   : > { %160 = sbr.rel (%p157_p3) target bundleno = 751 (0x2ef), region = 32  ;;  %s1029_s9 = sshll.u32 (!%p157_p3), %s1505_s5, 6 }
  0x31   : > { %s163_s10 = scalar_lea.sflag (!%p157_p3), [#allocation4], %s1505_s5  ;;  %s1509_s11 = scalar_lea.vmem (!%p157_p3), [#allocation3], %s1029_s9 }
  0x37   : > { %1313 = dma.done.wait (%p1444_p6), %s163_s10, 1024  }
  0x38   : > { %1315 = vsyncadd (%p1444_p6), %s163_s10, 4294966272  ;;  %vm203_vm0 = vcmask 1041409   ;;  %vm205_vm1 = vcmask 1045509   ;;  %vm208_vm2 = vcmask 1042434   ;;  %vm210_vm3 = vcmask 1046534   ;;  %s1340_s23 = smov 121  }
  0x39   : > { %v1339_v0 = vmov 0.0   ;;  %v288_v1 = vld [vmem:[%s1509_s11 + $0x4] sm:$0x1]  ;;  %v289_v2 = vld [vmem:[%s1509_s11 + $0x14] sm:$0x1]  ;;  %vm213_vm4 = vcmask 1043459  }
  0x3a   : > { %189 = vst [vmem:[#allocation2] sm:$0xff] %v1339_v0  ;;  %781 = vmatprep.mubr.f32.mxu0 %v1339_v0  ;;  %v290_v3 = vld [vmem:[%s1509_s11 + $0x24] sm:$0x1]  ;;  %v291_v4 = vld [vmem:[%s1509_s11 + $0x34] sm:$0x1]  ;;  %v296_v5 = vrot.slane %v289_v2, 7 }
  0x3b   : > { %v299_v6 = vrot.slane %v290_v3, 6  ;;  %v194_v7 = vld [vmem:[%s1509_s11] sm:$0x1]  ;;  %v302_v8 = vrot.slane %v291_v4, 5  ;;  %v195_v9 = vld [vmem:[%s1509_s11 + $0x10] sm:$0x1] }
  0x3c   : > { %v196_v10 = vld [vmem:[%s1509_s11 + $0x20] sm:$0x1]  ;;  %v297_v11 = vsel %vm203_vm0, %v296_v5, %v288_v1  ;;  %v197_v12 = vld [vmem:[%s1509_s11 + $0x30] sm:$0x1]  ;;  %v202_v13 = vrot.slane %v195_v9, 7  ;;  %vm215_vm5 = vcmask 1047559  }
  0x3d   : > { %v207_v14 = vrot.slane %v196_v10, 6  ;;  %v244_v15 = vld [vmem:[%s1509_s11 + $0x2] sm:$0x1]  ;;  %v298_v16 = vsel %vm205_vm1, %v296_v5, %v297_v11  ;;  %v212_v17 = vrot.slane %v197_v12, 5  ;;  %v245_v18 = vld [vmem:[%s1509_s11 + $0x12] sm:$0x1] }
  0x3e   : > { %v246_v19 = vld [vmem:[%s1509_s11 + $0x22] sm:$0x1]  ;;  %v300_v20 = vsel %vm208_vm2, %v299_v6, %v298_v16  ;;  %v204_v21 = vsel %vm203_vm0, %v202_v13, %v194_v7  ;;  %v247_v22 = vld [vmem:[%s1509_s11 + $0x32] sm:$0x1]  ;;  %v252_v23 = vrot.slane %v245_v18, 7  ;;  %s1341_s4 = smov 25  }
  0x3f   : > { %v255_v24 = vrot.slane %v246_v19, 6  ;;  %v222_v25 = vld [vmem:[%s1509_s11 + $0x1] sm:$0x1]  ;;  %v301_v26 = vsel %vm210_vm3, %v299_v6, %v300_v20  ;;  %v206_v27 = vsel %vm205_vm1, %v202_v13, %v204_v21  ;;  %v258_v28 = vrot.slane %v247_v22, 5  ;;  %v223_v29 = vld [vmem:[%s1509_s11 + $0x11] sm:$0x1] }
  0x40   : > { %v224_v30 = vld [vmem:[%s1509_s11 + $0x21] sm:$0x1]  ;;  %v303_v31 = vsel %vm213_vm4, %v302_v8, %v301_v26  ;;  %v209_v32 = vsel %vm208_vm2, %v207_v14, %v206_v27  ;;  %v253_v33 = vsel %vm203_vm0, %v252_v23, %v244_v15  ;;  %v225_v34 = vld [vmem:[%s1509_s11 + $0x31] sm:$0x1]  ;;  %v230_v35 = vrot.slane %v223_v29, 7  ;;  %s1342_s6 = smov 73  }
  0x41   : > { %v304_v36 = vsel %vm215_vm5, %v302_v8, %v303_v31  ;;  %v211_v37 = vsel %vm210_vm3, %v207_v14, %v209_v32  ;;  %v254_v38 = vsel %vm205_vm1, %v252_v23, %v253_v33  ;;  %v233_v39 = vrot.slane %v224_v30, 6  ;;  %v316_v40 = vld [vmem:[%s1509_s11 + $0x15] sm:$0x1]  ;;  %v317_v41 = vld [vmem:[%s1509_s11 + $0x25] sm:$0x1]  ;;  %s1343_s7 = smov 49  }
  0x42   : > { %305 = vrot.lane.b32.xlu1 %v304_v36, %s1340_s23  ;;  %v214_v42 = vsel %vm213_vm4, %v212_v17, %v211_v37  ;;  %v256_v43 = vsel %vm208_vm2, %v255_v24, %v254_v38  ;;  %v231_v44 = vsel %vm203_vm0, %v230_v35, %v222_v25  ;;  %v236_v45 = vrot.slane %v225_v34, 5  ;;  %v315_v46 = vld [vmem:[%s1509_s11 + $0x5] sm:$0x1]  ;;  %v318_v47 = vld [vmem:[%s1509_s11 + $0x35] sm:$0x1]  ;;  %s1344_s8 = smov 17  }
  0x43   : > { %v216_v48 = vsel %vm215_vm5, %v212_v17, %v214_v42  ;;  %v257_v49 = vsel %vm210_vm3, %v255_v24, %v256_v43  ;;  %v232_v50 = vsel %vm205_vm1, %v230_v35, %v231_v44  ;;  %v323_v51 = vrot.slane %v316_v40, 7  ;;  %v267_v52 = vld [vmem:[%s1509_s11 + $0x13] sm:$0x1]  ;;  %v268_v53 = vld [vmem:[%s1509_s11 + $0x23] sm:$0x1]  ;;  %s1345_s17 = smov 97  }
  0x44   : > { %217 = vrot.lane.b32.xlu0 %v216_v48, %s1341_s4  ;;  %v259_v54 = vsel %vm213_vm4, %v258_v28, %v257_v49  ;;  %v234_v55 = vsel %vm208_vm2, %v233_v39, %v232_v50  ;;  %v326_v56 = vrot.slane %v317_v41, 6  ;;  %v329_v57 = vrot.slane %v318_v47, 5  ;;  %v266_v58 = vld [vmem:[%s1509_s11 + $0x3] sm:$0x1]  ;;  %v269_v59 = vld [vmem:[%s1509_s11 + $0x33] sm:$0x1] }
  0x45   : > { %v260_v60 = vsel %vm215_vm5, %v258_v28, %v259_v54  ;;  %v235_v61 = vsel %vm210_vm3, %v233_v39, %v234_v55  ;;  %v324_v62 = vsel %vm203_vm0, %v323_v51, %v315_v46  ;;  %v274_v63 = vrot.slane %v267_v52, 7  ;;  %v404_v1 = vld [vmem:[%s1509_s11 + $0x19] sm:$0x1]  ;;  %v405_v2 = vld [vmem:[%s1509_s11 + $0x29] sm:$0x1]  ;;  %s1346_s19 = smov 113  }
  0x46   : > { %261 = vrot.lane.b32.xlu1 %v260_v60, %s1342_s6  ;;  %v237_v3 = vsel %vm213_vm4, %v236_v45, %v235_v61  ;;  %v325_v4 = vsel %vm205_vm1, %v323_v51, %v324_v62  ;;  %v277_v5 = vrot.slane %v268_v53, 6  ;;  %v280_v6 = vrot.slane %v269_v59, 5  ;;  %v403_v7 = vld [vmem:[%s1509_s11 + $0x9] sm:$0x1]  ;;  %v406_v8 = vld [vmem:[%s1509_s11 + $0x39] sm:$0x1] }
  0x47   : > { %v238_v9 = vsel %vm215_vm5, %v236_v45, %v237_v3  ;;  %v327_v10 = vsel %vm208_vm2, %v326_v56, %v325_v4  ;;  %v275_v11 = vsel %vm203_vm0, %v274_v63, %v266_v58  ;;  %v411_v12 = vrot.slane %v404_v1, 7  ;;  %v338_v13 = vld [vmem:[%s1509_s11 + $0x16] sm:$0x1]  ;;  %v339_v14 = vld [vmem:[%s1509_s11 + $0x26] sm:$0x1]  ;;  %s1347_s20 = smov 41  }
  0x48   : > { %239 = vrot.lane.b32.xlu0 %v238_v9, %s1343_s7  ;;  %v328_v15 = vsel %vm210_vm3, %v326_v56, %v327_v10  ;;  %v276_v16 = vsel %vm205_vm1, %v274_v63, %v275_v11  ;;  %v414_v17 = vrot.slane %v405_v2, 6  ;;  %v417_v18 = vrot.slane %v406_v8, 5  ;;  %v337_v19 = vld [vmem:[%s1509_s11 + $0x6] sm:$0x1]  ;;  %v340_v20 = vld [vmem:[%s1509_s11 + $0x36] sm:$0x1] }
  0x49   : > { %v330_v21 = vsel %vm213_vm4, %v329_v57, %v328_v15  ;;  %v278_v22 = vsel %vm208_vm2, %v277_v5, %v276_v16  ;;  %v412_v23 = vsel %vm203_vm0, %v411_v12, %v403_v7  ;;  %v345_v24 = vrot.slane %v338_v13, 7  ;;  %v382_v25 = vld [vmem:[%s1509_s11 + $0x18] sm:$0x1]  ;;  %v383_v30 = vld [vmem:[%s1509_s11 + $0x28] sm:$0x1]  ;;  %s1348_s22 = smov 89  }
  0x4a   : > { %v331_v26 = vsel %vm215_vm5, %v329_v57, %v330_v21  ;;  %v279_v27 = vsel %vm210_vm3, %v277_v5, %v278_v22  ;;  %v413_v28 = vsel %vm205_vm1, %v411_v12, %v412_v23  ;;  %v348_v29 = vrot.slane %v339_v14, 6  ;;  %v384_v31 = vld [vmem:[%s1509_s11 + $0x38] sm:$0x1]  ;;  %v381_v36 = vld [vmem:[%s1509_s11 + $0x8] sm:$0x1]  ;;  %s1349_s26 = smov 65  }
  0x4b   : > { %332 = vrot.lane.b32.xlu1 %v331_v26, %s1344_s8  ;;  %v281_v32 = vsel %vm213_vm4, %v280_v6, %v279_v27  ;;  %v415_v33 = vsel %vm208_vm2, %v414_v17, %v413_v28  ;;  %v346_v34 = vsel %vm203_vm0, %v345_v24, %v337_v19  ;;  %v351_v35 = vrot.slane %v340_v20, 5  ;;  %v360_v37 = vld [vmem:[%s1509_s11 + $0x17] sm:$0x1]  ;;  %v361_v42 = vld [vmem:[%s1509_s11 + $0x27] sm:$0x1]  ;;  %s1350_s27 = smov 33  }
  0x4c   : > { %v282_v38 = vsel %vm215_vm5, %v280_v6, %v281_v32  ;;  %v416_v39 = vsel %vm210_vm3, %v414_v17, %v415_v33  ;;  %v347_v40 = vsel %vm205_vm1, %v345_v24, %v346_v34  ;;  %v389_v41 = vrot.slane %v382_v25, 7  ;;  %v362_v43 = vld [vmem:[%s1509_s11 + $0x37] sm:$0x1]  ;;  %v359_v48 = vld [vmem:[%s1509_s11 + $0x7] sm:$0x1]  ;;  %s1351_s28 = smov 9  }
  0x4d   : > { %283 = vrot.lane.b32.xlu0 %v282_v38, %s1345_s17  ;;  %v418_v44 = vsel %vm213_vm4, %v417_v18, %v416_v39  ;;  %v349_v45 = vsel %vm208_vm2, %v348_v29, %v347_v40  ;;  %v392_v46 = vrot.slane %v383_v30, 6  ;;  %v395_v47 = vrot.slane %v384_v31, 5  ;;  %v453_v49 = vld [vmem:[%s1509_s11 + $0x1b] sm:$0x1]  ;;  %v454_v54 = vld [vmem:[%s1509_s11 + $0x2b] sm:$0x1] }
  0x4e   : > { %v419_v50 = vsel %vm215_vm5, %v417_v18, %v418_v44  ;;  %v350_v51 = vsel %vm210_vm3, %v348_v29, %v349_v45  ;;  %v390_v52 = vsel %vm203_vm0, %v389_v41, %v381_v36  ;;  %v367_v53 = vrot.slane %v360_v37, 7  ;;  %v455_v55 = vld [vmem:[%s1509_s11 + $0x3b] sm:$0x1]  ;;  %v452_v60 = vld [vmem:[%s1509_s11 + $0xb] sm:$0x1]  ;;  %s1352_s29 = smov 81  }
  0x4f   : > { %420 = vrot.lane.b32.xlu1 %v419_v50, %s1346_s19  ;;  %v352_v56 = vsel %vm213_vm4, %v351_v35, %v350_v51  ;;  %v391_v57 = vsel %vm205_vm1, %v389_v41, %v390_v52  ;;  %v370_v58 = vrot.slane %v361_v42, 6  ;;  %v373_v59 = vrot.slane %v362_v43, 5  ;;  %v431_v61 = vld [vmem:[%s1509_s11 + $0x1a] sm:$0x1]  ;;  %v432_v3 = vld [vmem:[%s1509_s11 + $0x2a] sm:$0x1] }
  0x50   : > { %v353_v62 = vsel %vm215_vm5, %v351_v35, %v352_v56  ;;  %v393_v63 = vsel %vm208_vm2, %v392_v46, %v391_v57  ;;  %v368_v1 = vsel %vm203_vm0, %v367_v53, %v359_v48  ;;  %v460_v2 = vrot.slane %v453_v49, 7  ;;  %v430_v8 = vld [vmem:[%s1509_s11 + $0xa] sm:$0x1]  ;;  %v433_v9 = vld [vmem:[%s1509_s11 + $0x3a] sm:$0x1]  ;;  %s1353_s30 = smov 57  }
  0x51   : > { %354 = vrot.lane.b32.xlu0 %v353_v62, %s1347_s20  ;;  %v394_v4 = vsel %vm210_vm3, %v392_v46, %v393_v63  ;;  %v369_v5 = vsel %vm205_vm1, %v367_v53, %v368_v1  ;;  %v463_v6 = vrot.slane %v454_v54, 6  ;;  %v466_v7 = vrot.slane %v455_v55, 5  ;;  %v497_v14 = vld [vmem:[%s1509_s11 + $0x1d] sm:$0x1]  ;;  %v498_v19 = vld [vmem:[%s1509_s11 + $0x2d] sm:$0x1] }
  0x52   : > { %v396_v10 = vsel %vm213_vm4, %v395_v47, %v394_v4  ;;  %v371_v11 = vsel %vm208_vm2, %v370_v58, %v369_v5  ;;  %v461_v12 = vsel %vm203_vm0, %v460_v2, %v452_v60  ;;  %v438_v13 = vrot.slane %v431_v61, 7  ;;  %v499_v20 = vld [vmem:[%s1509_s11 + $0x3d] sm:$0x1]  ;;  %v496_v25 = vld [vmem:[%s1509_s11 + $0xd] sm:$0x1]  ;;  %s1354_s9 = smov 1  }
  0x53   : > { %v397_v15 = vsel %vm215_vm5, %v395_v47, %v396_v10  ;;  %v372_v16 = vsel %vm210_vm3, %v370_v58, %v371_v11  ;;  %v462_v17 = vsel %vm205_vm1, %v460_v2, %v461_v12  ;;  %v441_v18 = vrot.slane %v432_v3, 6  ;;  %v475_v26 = vld [vmem:[%s1509_s11 + $0x1c] sm:$0x1]  ;;  %v476_v31 = vld [vmem:[%s1509_s11 + $0x2c] sm:$0x1]  ;;  %s1355_s10 = smov 105  }
  0x54   : > { %398 = vrot.lane.b32.xlu1 %v397_v15, %s1348_s22  ;;  %v374_v21 = vsel %vm213_vm4, %v373_v59, %v372_v16  ;;  %v464_v22 = vsel %vm208_vm2, %v463_v6, %v462_v17  ;;  %v439_v23 = vsel %vm203_vm0, %v438_v13, %v430_v8  ;;  %v444_v24 = vrot.slane %v433_v9, 5  ;;  %v477_v32 = vld [vmem:[%s1509_s11 + $0x3c] sm:$0x1]  ;;  %v474_v37 = vld [vmem:[%s1509_s11 + $0xc] sm:$0x1]  ;;  %s1357_s23 = smov 126  }
  0x55   : > { %v375_v27 = vsel %vm215_vm5, %v373_v59, %v374_v21  ;;  %v465_v28 = vsel %vm210_vm3, %v463_v6, %v464_v22  ;;  %v440_v29 = vsel %vm205_vm1, %v438_v13, %v439_v23  ;;  %v504_v30 = vrot.slane %v497_v14, 7  ;;  %v541_v38 = vld [vmem:[%s1509_s11 + $0x1f] sm:$0x1]  ;;  %v542_v43 = vld [vmem:[%s1509_s11 + $0x2f] sm:$0x1]  ;;  %s1358_s4 = smov 80  }
  0x56   : > { %376 = vrot.lane.b32.xlu0 %v375_v27, %s1349_s26  ;;  %v467_v33 = vsel %vm213_vm4, %v466_v7, %v465_v28  ;;  %v442_v34 = vsel %vm208_vm2, %v441_v18, %v440_v29  ;;  %v507_v35 = vrot.slane %v498_v19, 6  ;;  %v510_v36 = vrot.slane %v499_v20, 5  ;;  %v543_v44 = vld [vmem:[%s1509_s11 + $0x3f] sm:$0x1]  ;;  %v540_v49 = vld [vmem:[%s1509_s11 + $0xf] sm:$0x1] }
  0x57   : > { %v468_v39 = vsel %vm215_vm5, %v466_v7, %v467_v33  ;;  %v443_v40 = vsel %vm210_vm3, %v441_v18, %v442_v34  ;;  %v505_v41 = vsel %vm203_vm0, %v504_v30, %v496_v25  ;;  %v482_v42 = vrot.slane %v475_v26, 7  ;;  %v519_v50 = vld [vmem:[%s1509_s11 + $0x1e] sm:$0x1]  ;;  %v520_v55 = vld [vmem:[%s1509_s11 + $0x2e] sm:$0x1]  ;;  %s1359_s6 = smov 127  }
  0x58   : > { %469 = vrot.lane.b32.xlu1 %v468_v39, %s1350_s27  ;;  %v445_v45 = vsel %vm213_vm4, %v444_v24, %v443_v40  ;;  %v506_v46 = vsel %vm205_vm1, %v504_v30, %v505_v41  ;;  %v485_v47 = vrot.slane %v476_v31, 6  ;;  %v488_v48 = vrot.slane %v477_v32, 5  ;;  %v518_v60 = vld [vmem:[%s1509_s11 + $0xe] sm:$0x1]  ;;  %v521_v61 = vld [vmem:[%s1509_s11 + $0x3e] sm:$0x1] }
  0x59   : > { %v446_v51 = vsel %vm215_vm5, %v444_v24, %v445_v45  ;;  %v508_v52 = vsel %vm208_vm2, %v507_v35, %v506_v46  ;;  %v483_v53 = vsel %vm203_vm0, %v482_v42, %v474_v37  ;;  %v548_v54 = vrot.slane %v541_v38, 7  ;;  %s1356_s11 = smov 103   ;;  %s1360_s7 = smov 104  }
  0x5a   : > { %447 = vrot.lane.b32.xlu0 %v446_v51, %s1351_s28  ;;  %v509_v56 = vsel %vm210_vm3, %v507_v35, %v508_v52  ;;  %v484_v57 = vsel %vm205_vm1, %v482_v42, %v483_v53  ;;  %v551_v58 = vrot.slane %v542_v43, 6  ;;  %v554_v59 = vrot.slane %v543_v44, 5  ;;  %s1362_s8 = smov 102   ;;  %s1363_s17 = smov 79   ;;  %v701_v52 = vld [vmem:[%s1849_s2] sm:$0xff] }
  0x5b   : > { %v511_v62 = vsel %vm213_vm4, %v510_v36, %v509_v56  ;;  %v486_v63 = vsel %vm208_vm2, %v485_v47, %v484_v57  ;;  %v549_v1 = vsel %vm203_vm0, %v548_v54, %v540_v49  ;;  %v526_v2 = vrot.slane %v519_v50, 7  ;;  %s1366_s19 = smov 78   ;;  %s1030_s28 = sshll.u32 %s1505_s5, 4 }
  0x5c   : > { %v512_v3 = vsel %vm215_vm5, %v510_v36, %v511_v62  ;;  %v487_v4 = vsel %vm210_vm3, %v485_v47, %v486_v63  ;;  %v550_v5 = vsel %vm205_vm1, %v548_v54, %v549_v1  ;;  %v529_v6 = vrot.slane %v520_v55, 6  ;;  %s1376_s20 = smov 96   ;;  %s1377_s22 = smov 72  }
  0x5d   : > { %513 = vrot.lane.b32.xlu1 %v512_v3, %s1352_s29  ;;  %v489_v7 = vsel %vm213_vm4, %v488_v48, %v487_v4  ;;  %v552_v8 = vsel %vm208_vm2, %v551_v58, %v550_v5  ;;  %v527_v9 = vsel %vm203_vm0, %v526_v2, %v518_v60  ;;  %v532_v10 = vrot.slane %v521_v61, 5  ;;  %s1367_s29 = smov 24   ;;  %s1378_s26 = smov 64  }
  0x5e   : > { %v490_v11 = vsel %vm215_vm5, %v488_v48, %v489_v7  ;;  %v553_v12 = vsel %vm210_vm3, %v551_v58, %v552_v8  ;;  %v528_v13 = vsel %vm205_vm1, %v526_v2, %v527_v9  ;;  %vm190_vm6 = vcmask 1043456   ;;  %s1379_s27 = smov 8   ;;  %p1857_p11 = scmp.ne.s32.totalorder %s1854_s24, 0 }
  0x5f   : > { %491 = vrot.lane.b32.xlu0 %v490_v11, %s1353_s30  ;;  %v555_v14 = vsel %vm213_vm4, %v554_v59, %v553_v12  ;;  %v530_v15 = vsel %vm208_vm2, %v529_v6, %v528_v13  ;;  %vm191_vm7 = vcmask 588804   ;;  %vm220_vm9 = vcmask 330952   ;;  %s1368_s30 = smov 40  }
  0x60   : > { %v556_v16 = vsel %vm215_vm5, %v554_v59, %v555_v14  ;;  %v531_v17 = vsel %vm210_vm3, %v529_v6, %v530_v15  ;;  %vm192_vm8 = vmor %vm191_vm7, %vm190_vm6  ;;  %vm242_vm10 = vcmask 527752   ;;  %vm264_vm11 = vcmask 724552  }
  0x61   : > { %557 = vrot.lane.b32.xlu1 %v556_v16, %s1354_s9  ;;  %v533_v18 = vsel %vm213_vm4, %v532_v10, %v531_v17  ;;  %193 = vst.msk [vmem:[#allocation2 + $0x8] sm:$0xff] %vm192_vm8, %v1339_v0  ;;  %vm311_vm12 = vcmask 1044424   ;;  %vm312_vm13 = vcmask 72708   ;;  %vm308_vm14 = vcmask 990208   ;;  %s1770_s9 = scalar_lea.vmem [#allocation6], %s1030_s28 }
  0x62   : > { %v534_v19 = vsel %vm215_vm5, %v532_v10, %v533_v18  ;;  %vm286_vm15 = vcmask 921352   ;;  %vm313_vm0 = vmor %vm312_vm13, %vm311_vm12  ;;  %vm335_vm1 = vcmask 265352   ;;  %vm357_vm2 = vcmask 462152  }
  0x63   : > { %535 = vrot.lane.b32.xlu0 %v534_v19, %s1355_s10  ;;  %vm426_vm3 = vcmask 1044360   ;;  %vm427_vm4 = vcmask 7172   ;;  %vm379_vm5 = vcmask 658952   ;;  %vm423_vm7 = vcmask 924672   ;;  %s1369_s10 = smov 16  }
  0x64   : > { %vm401_vm8 = vcmask 855752   ;;  %vm494_vm12 = vcmask 593352   ;;  %vm516_vm13 = vcmask 790152   ;;  %v1361_v49 = vmov 0.0|0.0  }
  0x65   : > { %1070 = vmatprep.subr.bf16.mxu1 %v1361_v49  ;;  %v1365_v51 = vmov 0  }
  0x66   : > { %1235 = vset.pattern.permute.xlu0 %v1365_v51 }
  0xb4   : > { %v306_v20 = vpop.permute.xlu1 %305 }
  0xb5   : > { %v307_v24 = vrot.slane %v306_v20, 4 }
  0xb6   : > { %v218_v21 = vpop.permute.xlu0 %217 }
  0xb7   : > { %221 = vst.msk [vmem:[#allocation2] sm:$0xf] %vm220_vm9, %v218_v21  ;;  %v309_v27 = vsel %vm308_vm14, %v307_v24, %v306_v20  ;;  %vm428_vm9 = vmor %vm427_vm4, %vm426_vm3  ;;  %vm560_vm14 = vcmask 134152   ;;  %vm594_vm3 = vcmask 1031168   ;;  %vm609_vm4 = vcmask 850944  }
  0xb8   : > { %v262_v22 = vpop.permute.xlu1 %261 }
  0xba   : > { %v240_v23 = vpop.permute.xlu0 %239 }
  0xbb   : > { %243 = vst.msk [vmem:[#allocation2] sm:$0xf] %vm242_vm10, %v240_v23  ;;  %vm450_vm10 = vcmask 199752  }
  0xbc   : > { %265 = vst.msk [vmem:[#allocation2] sm:$0xf] %vm264_vm11, %v262_v22  ;;  %vm472_vm11 = vcmask 396552  }
  0xbd   : > { %v333_v25 = vpop.permute.xlu1 %332 }
  0xbf   : > { %v284_v26 = vpop.permute.xlu0 %283 }
  0xc0   : > { %287 = vst.msk [vmem:[#allocation2] sm:$0xf] %vm286_vm15, %v284_v26  ;;  %vm538_vm15 = vcmask 986952  }
  0xc1   : > { %314 = vst.msk [vmem:[#allocation2] sm:$0xff] %vm313_vm0, %v309_v27  ;;  %v421_v28 = vpop.permute.xlu1 %420  ;;  %vm1364_vm0 = vmmov 0  }
  0xc2   : > { %336 = vst.msk [vmem:[#allocation2 + $0x4] sm:$0xf] %vm335_vm1, %v333_v25  ;;  %v422_v30 = vrot.slane %v421_v28, 4  ;;  %1059 = vmatprep.mubr.msk.f32.mxu1 %vm1364_vm0, %v1339_v0  ;;  %vm578_vm1 = vcmask 1039360   ;;  %vm892_vm0 = vcmask 786048  }
  0xc3   : > { %v355_v29 = vpop.permute.xlu0 %354 }
  0xc4   : > { %358 = vst.msk [vmem:[#allocation2 + $0x4] sm:$0xf] %vm357_vm2, %v355_v29  ;;  %v424_v33 = vsel %vm423_vm7, %v422_v30, %v421_v28  ;;  %vm624_vm2 = vcmask 842752   ;;  %vm639_vm7 = vcmask 834560  }
  0xc6   : > { %v399_v31 = vpop.permute.xlu1 %398 }
  0xc8   : > { %v377_v32 = vpop.permute.xlu0 %376 }
  0xc9   : > { %380 = vst.msk [vmem:[#allocation2 + $0x4] sm:$0xf] %vm379_vm5, %v377_v32  ;;  %vm654_vm5 = vcmask 654336  }
  0xca   : > { %402 = vst.msk [vmem:[#allocation2 + $0x4] sm:$0xf] %vm401_vm8, %v399_v31  ;;  %v470_v34 = vpop.permute.xlu1 %469  ;;  %vm669_vm8 = vcmask 646144  }
  0xcb   : > { %429 = vst.msk [vmem:[#allocation2 + $0x4] sm:$0xff] %vm428_vm9, %v424_v33  ;;  %vm684_vm9 = vcmask 637952  }
  0xcc   : > { %v448_v35 = vpop.permute.xlu0 %447 }
  0xcd   : > { %451 = vst.msk [vmem:[#allocation2 + $0x8] sm:$0xf] %vm450_vm10, %v448_v35  ;;  %vm707_vm10 = vcmask 293888  }
  0xce   : > { %473 = vst.msk [vmem:[#allocation2 + $0x8] sm:$0xf] %vm472_vm11, %v470_v34  ;;  %vm861_vm11 = vcmask 130048  }
  0xcf   : > { %v514_v36 = vpop.permute.xlu1 %513 }
  0xd1   : > { %v492_v37 = vpop.permute.xlu0 %491 }
  0xd2   : > { %495 = vst.msk [vmem:[#allocation2 + $0x8] sm:$0xf] %vm494_vm12, %v492_v37  ;;  %v1679_v40 = vld [vmem:[#allocation2] sm:$0xff]  ;;  %vm872_vm12 = vcmask 392448  }
  0xd3   : > { %v558_v38 = vpop.permute.xlu1 %557  ;;  %517 = vst.msk [vmem:[#allocation2 + $0x8] sm:$0xf] %vm516_vm13, %v514_v36  ;;  %v1683_v41 = vcombine.high %v1679_v40, %v1679_v40  ;;  %v568_v44 = vcombine.low %v1679_v40, %v1679_v40  ;;  %vm877_vm13 = vcmask 523648  }
  0xd4   : > { %561 = vst.msk [vmem:[#allocation2 + $0xc] sm:$0xf] %vm560_vm14, %v558_v38  ;;  %vm882_vm14 = vcmask 654848  }
  0xd5   : > { %v536_v39 = vpop.permute.xlu0 %535 }
  0xd6   : > { %539 = vst.msk [vmem:[#allocation2 + $0x8] sm:$0xf] %vm538_vm15, %v536_v39  ;;  %vm889_vm15 = vcmask 719872  }
  0xdd   : > { %v1685_v42 = vld [vmem:[#allocation2 + $0x8] sm:$0xff] }
  0xde   : > { %v1180_v43 = vpack.i.bf16 %v1685_v42, %v1683_v41  ;;  %v1170_v45 = vpack.i.bf16 %v1685_v42, %v568_v44  ;;  %v569_v46 = vcombine.low %v1685_v42, %v1685_v42  ;;  %v585_v48 = vcombine.high %v1685_v42, %v1685_v42 }
  0xe0   : > { %1181 = vrot.lane.b32.xlu0 %v1180_v43, %s1356_s11  ;;  %1166 = vrot.lane.b32.xlu1 %v1180_v43, %s1357_s23  ;;  %v1195_v47 = vpack.i.bf16 %v569_v46, %v1679_v40  ;;  %v1205_v50 = vpack.i.bf16 %v585_v48, %v1679_v40 }
  0xe4   : > { %1186 = vrot.lane.b32.xlu0 %v1180_v43, %s1358_s4  ;;  %1171 = vrot.lane.b32.xlu1 %v1170_v45, %s1359_s6 }
  0xe8   : > { %1176 = vrot.lane.b32.xlu1 %v1170_v45, %s1360_s7  ;;  %1196 = vrot.lane.b32.xlu0 %v1195_v47, %s1359_s6  ;;  %s1372_s6 = smov 120  }
  0xec   : > { %1191 = vrot.lane.b32.xlu1 %v1170_v45, %s1362_s8  ;;  %1201 = vrot.lane.b32.xlu0 %v1195_v47, %s1360_s7 }
  0xf0   : > { %1211 = vrot.lane.b32.xlu1 %v1195_v47, %s1362_s8  ;;  %1206 = vrot.lane.b32.xlu0 %v1205_v50, %s1357_s23  ;;  %s1371_s23 = smov 88   ;;  %s1373_s8 = smov 56  }
  0xf4   : > { %1216 = vrot.lane.b32.xlu1 %v1195_v47, %s1363_s17  ;;  %1226 = vrot.lane.b32.xlu0 %v1205_v50, %s1356_s11  ;;  %s1370_s11 = smov 32  }
  0xf8   : > { %1221 = vrot.lane.b32.xlu1 %v1170_v45, %s1363_s17  ;;  %1231 = vrot.lane.b32.xlu0 %v1205_v50, %s1358_s4  ;;  %s1374_s17 = smov 112  }
  0xfc   : > { %680 = vrot.lane.b32.xlu1 %v1685_v42, %s1366_s19  ;;  %678 = vrot.lane.b32.xlu0 %v1683_v41, %s1366_s19 }
 0x100   : > { %682 = vrot.lane.b32.xlu1 %v585_v48, %s1366_s19  ;;  %676 = vrot.lane.b32.xlu0 %v1679_v40, %s1366_s19  ;;  %s1375_s19 = smov 48  }
 0x104   : > { %704 = vperm.xlu0 %1235, %v701_v52  }
 0x152   : > { %v1710_v53 = vpop.permute.xlu0 %1181  ;;  %v1167_v54 = vpop.permute.xlu1 %1166 }
 0x153   : > { %v1184_v61 = vunpack.i.h.bf16 %v1710_v53  ;;  %v1183_v62 = vunpack.i.l.bf16 %v1710_v53  ;;  %v1169_v63 = vunpack.i.h.bf16 %v1167_v54  ;;  %v1168_v1 = vunpack.i.l.bf16 %v1167_v54 }
 0x155   : > { %v626_v8 = vsel %vm624_vm2, %v1183_v62, %v1184_v61  ;;  %v596_v10 = vsel %vm594_vm3, %v1168_v1, %v1169_v63 }
 0x156   : > { %v1712_v55 = vpop.permute.xlu0 %1186  ;;  %v1172_v56 = vpop.permute.xlu1 %1171 }
 0x157   : > { %v1173_v7 = vunpack.i.l.bf16 %v1172_v56  ;;  %v1174_v9 = vunpack.i.h.bf16 %v1172_v56  ;;  %v1189_v22 = vunpack.i.h.bf16 %v1712_v55  ;;  %v1188_v23 = vunpack.i.l.bf16 %v1712_v55 }
 0x15a   : > { %v1177_v57 = vpop.permute.xlu1 %1176  ;;  %v1197_v58 = vpop.permute.xlu0 %1196 }
 0x15b   : > { %v1199_v59 = vunpack.i.h.bf16 %v1197_v58  ;;  %v1198_v60 = vunpack.i.l.bf16 %v1197_v58  ;;  %v1178_v12 = vunpack.i.l.bf16 %v1177_v57  ;;  %v1179_v24 = vunpack.i.h.bf16 %v1177_v57 }
 0x15d   : > { %v580_v6 = vsel %vm578_vm1, %v1198_v60, %v1199_v59  ;;  %v579_v17 = vsel %vm578_vm1, %v1173_v7, %v1198_v60  ;;  %v581_v29 = vsel %vm578_vm1, %v1199_v59, %v1174_v9  ;;  %vm897_vm1 = vcmask 917248  }
 0x15e   : > { %v1716_v2 = vpop.permute.xlu1 %1191  ;;  %v1202_v3 = vpop.permute.xlu0 %1201  ;;  %v689_v15 = vsel %vm190_vm6, %v1683_v41, %v580_v6  ;;  %v688_v28 = vsel %vm190_vm6, %v1679_v40, %v579_v17  ;;  %v656_v41 = vsel %vm654_vm5, %v1188_v23, %v1189_v22  ;;  %v690_v43 = vsel %vm190_vm6, %v1685_v42, %v581_v29 }
 0x15f   : > { %v1204_v4 = vunpack.i.h.bf16 %v1202_v3  ;;  %v1203_v5 = vunpack.i.l.bf16 %v1202_v3  ;;  %v1194_v45 = vunpack.i.h.bf16 %v1716_v2  ;;  %v1193_v46 = vunpack.i.l.bf16 %v1716_v2 }
 0x161   : > { %v611_v11 = vsel %vm609_vm4, %v1203_v5, %v1204_v4  ;;  %v610_v27 = vsel %vm609_vm4, %v1178_v12, %v1203_v5  ;;  %v612_v35 = vsel %vm609_vm4, %v1204_v4, %v1179_v24 }
 0x162   : > { %v1212_v13 = vpop.permute.xlu1 %1211  ;;  %v1207_v14 = vpop.permute.xlu0 %1206  ;;  %v692_v16 = vsel %vm190_vm6, %v596_v10, %v611_v11 }
 0x163   : > { %v1214_v18 = vunpack.i.h.bf16 %v1212_v13  ;;  %v1213_v19 = vunpack.i.l.bf16 %v1212_v13  ;;  %v1209_v20 = vunpack.i.h.bf16 %v1207_v14  ;;  %v1208_v21 = vunpack.i.l.bf16 %v1207_v14 }
 0x164   : > { %v1062_v25 = vpack.c.bf16 %v692_v16, %v689_v15  ;;  %v700_v15 = vld [vmem:[%s1848_s1] sm:$0xff] }
 0x165   : > { %v595_v26 = vsel %vm594_vm3, %v1208_v21, %v1168_v1  ;;  %v641_v30 = vsel %vm639_vm7, %v1213_v19, %v1214_v18  ;;  %v597_v34 = vsel %vm594_vm3, %v1169_v63, %v1209_v20  ;;  %v642_v59 = vsel %vm639_vm7, %v1214_v18, %v1194_v45 }
 0x166   : > { %1063 = vmatprep.subr.bf16.mxu0 %v1062_v25  ;;  %v1217_v31 = vpop.permute.xlu1 %1216  ;;  %v1227_v32 = vpop.permute.xlu0 %1226  ;;  %v691_v33 = vsel %vm190_vm6, %v595_v26, %v610_v27  ;;  %v693_v44 = vsel %vm190_vm6, %v597_v34, %v612_v35  ;;  %v695_v54 = vsel %vm190_vm6, %v626_v8, %v641_v30  ;;  %v640_v60 = vsel %vm639_vm7, %v1193_v46, %v1213_v19 }
 0x167   : > { %v1219_v36 = vunpack.i.h.bf16 %v1217_v31  ;;  %v1218_v37 = vunpack.i.l.bf16 %v1217_v31  ;;  %v1229_v38 = vunpack.i.h.bf16 %v1227_v32  ;;  %v1228_v39 = vunpack.i.l.bf16 %v1227_v32 }
 0x168   : > { %v1064_v40 = vpack.c.bf16 %v691_v33, %v688_v28  ;;  %v1071_v48 = vpack.c.bf16 %v693_v44, %v690_v43 }
 0x169   : > { %v671_v47 = vsel %vm669_vm8, %v1218_v37, %v1219_v36  ;;  %v627_v50 = vsel %vm624_vm2, %v1184_v61, %v1229_v38  ;;  %v625_v51 = vsel %vm624_vm2, %v1228_v39, %v1183_v62  ;;  %vm902_vm2 = vcmask 1048448  }
 0x16a   : > { %1065 = vmatpush1.bf16.msra.mxu0 %v1064_v40  ;;  %v1222_v52 = vpop.permute.xlu1 %1221  ;;  %v1232_v53 = vpop.permute.xlu0 %1231  ;;  %v698_v42 = vsel %vm190_vm6, %v656_v41, %v671_v47  ;;  %1072 = vmatpush3.bf16.msra.mxu1 %v1071_v48  ;;  %v694_v5 = vsel %vm190_vm6, %v625_v51, %v640_v60  ;;  %v696_v7 = vsel %vm190_vm6, %v627_v50, %v642_v59 }
 0x16b   : > { %v1224_v55 = vunpack.i.h.bf16 %v1222_v52  ;;  %v1223_v56 = vunpack.i.l.bf16 %v1222_v52  ;;  %v1234_v57 = vunpack.i.h.bf16 %v1232_v53  ;;  %v1233_v58 = vunpack.i.l.bf16 %v1232_v53  ;;  %1073 = vmatprep.subr.bf16.mxu1 %v1361_v49 }
 0x16c   : > { %v1066_v63 = vpack.c.bf16 %v698_v42, %v695_v54 }
 0x16d   : > { %v670_v61 = vsel %vm669_vm8, %v1223_v56, %v1218_v37  ;;  %v672_v62 = vsel %vm669_vm8, %v1219_v36, %v1224_v55  ;;  %v657_v1 = vsel %vm654_vm5, %v1189_v22, %v1234_v57  ;;  %v655_v2 = vsel %vm654_vm5, %v1233_v58, %v1188_v23 }
 0x16e   : > { %1067 = vmatprep.subr.bf16.mxu0 %v1066_v63  ;;  %v681_v3 = vpop.permute.xlu1 %680  ;;  %v679_v4 = vpop.permute.xlu0 %678  ;;  %v697_v6 = vsel %vm190_vm6, %v655_v2, %v670_v61  ;;  %v699_v8 = vsel %vm190_vm6, %v657_v1, %v672_v62 }
 0x16f   : > { %v1068_v49 = vpack.c.bf16 %v697_v6, %v694_v5  ;;  %v1074_v9 = vpack.c.bf16 %v699_v8, %v696_v7  ;;  %v686_v10 = vsel %vm684_vm9, %v679_v4, %v681_v3 }
 0x171   : > { %1069 = vmatpush1.bf16.msra.mxu0 %v1068_v49  ;;  %1075 = vmatpush3.bf16.msra.mxu1 %v1074_v9 }
 0x172   : > { %v683_v11 = vpop.permute.xlu1 %682  ;;  %v677_v12 = vpop.permute.xlu0 %676  ;;  %1031 = vmatprep.subr.msk.mxu0 %vm190_vm6, %v686_v10  ;;  %1057 = vmatprep.subr.mxu1 %v1339_v0 }
 0x173   : > { %v687_v13 = vsel %vm684_vm9, %v681_v3, %v683_v11  ;;  %v685_v14 = vsel %vm684_vm9, %v677_v12, %v679_v4 }
 0x175   : > { %1032 = vmatpush1.msk.msra.mxu0 %vm190_vm6, %v685_v14  ;;  %1058 = vmatpush3.msk.msra.mxu1 %vm190_vm6, %v687_v13  ;;  %vm867_vm6 = vcmask 261248  }
 0x176   : > { %1033 = vmatmul.mubr.msk.f32.vlgmr.msra.gmra.mrb[0].mxu0 %vm707_vm10, %v700_v15  ;;  %1060 = vmatmul.mubr.msk.f32.vlgmr.msra.gmra.mrb[0].mxu1 %vm707_vm10, %v700_v15 }
 0x183   : > { %v705_v16 = vpop.permute.xlu0 %704 }
 0x249   : > { %v783_v17 = vpop.f32.mrb[0].mxu0  ;;  %v854_v18 = vpop.f32.mrb[0].mxu1 }
 0x24a   : > { %v784_v0 = vadd.f32 %v783_v17, %v705_v16  ;;  %v855_v19 = vadd.f32 %v854_v18, %v705_v16  ;;  %v785_v20 = vpop.f32.mrb[1].mxu0  ;;  %v1061_v21 = vpop.f32.mrb[1].mxu1 }
 0x24b   : > { %v786_v24 = vadd.f32 %v785_v20, %v705_v16 }
 0x24c   : > { %v858_v22 = vmax.f32 %v784_v0, 0.0  ;;  %v860_v23 = vmax.f32 %v855_v19, 0.0 }
 0x24d   : > { %v859_v25 = vmax.f32 %v786_v24, 0.0 }
 0x24e   : > { %925 = vrot.lane.b32.xlu1 %v860_v23, %s1367_s29  ;;  %917 = vrot.lane.b32.xlu0 %v860_v23, %s1368_s30  ;;  %862 = vst.msk [vmem:[%s1770_s9] sm:$0xff] %vm861_vm11, %v858_v22 }
 0x252   : > { %929 = vrot.lane.b32.xlu1 %v860_v23, %s1369_s10  ;;  %921 = vrot.lane.b32.xlu0 %v860_v23, %s1370_s11  ;;  %s1380_s11 = smov [#allocation6]  }
 0x256   : > { %885 = vrot.lane.b32.xlu0 %v858_v22, %s1371_s23  ;;  %864 = vrot.lane.b32.xlu1 %v858_v22, %s1372_s6 }
 0x25a   : > { %908 = vrot.lane.b32.xlu0 %v859_v25, %s1373_s8  ;;  %869 = vrot.lane.b32.xlu1 %v858_v22, %s1374_s17 }
 0x25e   : > { %912 = vrot.lane.b32.xlu0 %v859_v25, %s1375_s19  ;;  %874 = vrot.lane.b32.xlu1 %v858_v22, %s1360_s7  ;;  %s952_s7 = sshll.u32 %s1770_s9, 4  ;;  %s1803_s7 = int_to_ptr.vmem [resolvable:$true] %s952_s7 }
 0x25f   : > { %s1268_s10 = scalar_lea.vmem %s1803_s7, 256 }
 0x260   : > { %p1269_p6 = scmp.ne.s32.totalorder %s1803_s7, %s1268_s10 }
 0x262   : > { %894 = vrot.lane.b32.xlu0 %v859_v25, %s1358_s4  ;;  %879 = vrot.lane.b32.xlu1 %v858_v22, %s1376_s20  ;;  %s1042_s4 = sshll.u32 %s1422_s16, 8  ;;  %s938_s16 = scalar_lea.sflag [#allocation5], %s1505_s5 }
 0x263   : > { %s1801_s30 = scalar_lea.hbm %s1850_s3, %s1042_s4  ;;  %p1270_p12 = pnand %p1269_p6, %p1857_p11 }
 0x265   : > { %p1271_p13 = pneg %p1270_p12 }
 0x266   : > { %899 = vrot.lane.b32.xlu0 %v859_v25, %s1377_s22  ;;  %904 = vrot.lane.b32.xlu1 %v859_v25, %s1378_s26 }
 0x26a   : > { %887 = vrot.lane.b32.xlu1 %v859_v25, %s1371_s23  ;;  %s1272_s23 = sshll.u32 %s1380_s11, 4  ;;  %s1273_s23 = int_to_ptr.vmem [resolvable:$false] %s1272_s23 }
 0x26b   : > { %s1274_s6 = scalar_lea.vmem %s1273_s23, 512  ;;  %p1275_p8 = scmp.lt.s32.totalorder %s1803_s7, %s1273_s23 }
 0x26c   : > { %p1276_p10 = scmp.lt.s32.totalorder %s1274_s6, %s1268_s10 }
 0x26e   : > { %933 = vrot.lane.b32.xlu1 %v860_v23, %s1379_s27  ;;  %p1277_p0 = por %p1276_p10, %p1275_p8 }
 0x270   : > { %p1278_p2 = pnand %p1277_p0, %p1271_p13 }
 0x2c0   : > { %v926_v26 = vpop.permute.xlu1 %925  ;;  %v918_v27 = vpop.permute.xlu0 %917 }
 0x2c4   : > { %v930_v28 = vpop.permute.xlu1 %929  ;;  %v922_v29 = vpop.permute.xlu0 %921 }
 0x2c8   : > { %v886_v30 = vpop.permute.xlu0 %885  ;;  %v865_v31 = vpop.permute.xlu1 %864 }
 0x2c9   : > { %868 = vst.msk [vmem:[%s1770_s9] sm:$0xff] %vm867_vm6, %v865_v31 }
 0x2cc   : > { %v870_v32 = vpop.permute.xlu1 %869  ;;  %v909_v33 = vpop.permute.xlu0 %908 }
 0x2cd   : > { %873 = vst.msk [vmem:[%s1770_s9] sm:$0xff] %vm872_vm12, %v870_v32 }
 0x2d0   : > { %v875_v34 = vpop.permute.xlu1 %874  ;;  %v913_v35 = vpop.permute.xlu0 %912 }
 0x2d1   : > { %878 = vst.msk [vmem:[%s1770_s9] sm:$0xff] %vm877_vm13, %v875_v34 }
 0x2d4   : > { %v880_v36 = vpop.permute.xlu1 %879  ;;  %v895_v38 = vpop.permute.xlu0 %894 }
 0x2d5   : > { %883 = vst.msk [vmem:[%s1770_s9] sm:$0xff] %vm882_vm14, %v880_v36 }
 0x2d8   : > { %v905_v37 = vpop.permute.xlu1 %904  ;;  %v900_v40 = vpop.permute.xlu0 %899 }
 0x2d9   : > { %907 = vst.msk [vmem:[%s1770_s9 + $0x8] sm:$0xff] %vm861_vm11, %v905_v37 }
 0x2da   : > { %911 = vst.msk [vmem:[%s1770_s9 + $0x8] sm:$0xff] %vm867_vm6, %v909_v33 }
 0x2db   : > { %915 = vst.msk [vmem:[%s1770_s9 + $0x8] sm:$0xff] %vm872_vm12, %v913_v35 }
 0x2dc   : > { %920 = vst.msk [vmem:[%s1770_s9 + $0x8] sm:$0xff] %vm877_vm13, %v918_v27  ;;  %v888_v39 = vpop.permute.xlu1 %887 }
 0x2dd   : > { %924 = vst.msk [vmem:[%s1770_s9 + $0x8] sm:$0xff] %vm882_vm14, %v922_v29  ;;  %v890_v41 = vsel %vm889_vm15, %v886_v30, %v888_v39 }
 0x2de   : > { %893 = vst.msk [vmem:[%s1770_s9] sm:$0xff] %vm892_vm0, %v890_v41  ;;  %928 = vst.msk [vmem:[%s1770_s9 + $0x8] sm:$0xff] %vm892_vm0, %v926_v26 }
 0x2df   : > { %898 = vst.msk [vmem:[%s1770_s9] sm:$0xff] %vm897_vm1, %v895_v38  ;;  %932 = vst.msk [vmem:[%s1770_s9 + $0x8] sm:$0xff] %vm897_vm1, %v930_v28 }
 0x2e0   : > { %v934_v43 = vpop.permute.xlu1 %933  ;;  %903 = vst.msk [vmem:[%s1770_s9] sm:$0xff] %vm902_vm2, %v900_v40 }
 0x2e1   : > { %936 = vst.msk [vmem:[%s1770_s9 + $0x8] sm:$0xff] %vm902_vm2, %v934_v43 }
 0x2e2   : > { %1281 = shalt.err (!%p1278_p2)
}
 0x2e3   : > { %s1282_s5 = scalar_lea.hbm %s1801_s30, 256  ;;  %s1286_s17 = scalar_lea.hbm %s1850_s3, 512 }
 0x2e4   : > { %p1283_p4 = scmp.ne.s32.totalorder %s1801_s30, %s1282_s5  ;;  %p1287_p9 = scmp.lt.u32.totalorder %s1801_s30, %s1850_s3 }
 0x2e5   : > { %p1288_p1 = scmp.lt.u32.totalorder %s1286_s17, %s1282_s5  ;;  %p1290_p6 = scmp.lt.u32.totalorder %s1282_s5, %s1801_s30 }
 0x2e6   : > { %p1284_p5 = pnand %p1283_p4, %p1857_p11 }
 0x2e7   : > { %p1289_p3 = por %p1288_p1, %p1287_p9 }
 0x2e8   : > { %p1285_p7 = pneg %p1284_p5 }
 0x2e9   : > { %p1291_p12 = por %p1290_p6, %p1289_p3 }
 0x2eb   : > { %p1292_p13 = pnand %p1291_p12, %p1285_p7 }
 0x2ed   : > { %1295 = shalt.err (!%p1292_p13)
}
 0x2ee   : > { %1078 = dma.vmem_to_hbm [thread:$0]  (%p1857_p11), %s1803_s7, 256, %s1801_s30, %s938_s16  }
 0x2ef PF: > { %s964_s22 = sand.u32 1, %s1322_s12   ;;  %p1858_p8 = scmp.ne.s32.totalorder %s1855_s25, 0 }
 0x2f0   : > { %p1859_p10 = scmp.ge.s32.totalorder %s1334_s15, 2  ;;  %s965_s26 = scalar_lea.sflag [#allocation5], %s964_s22 }
 0x2f2   : > { %p1085_p0 = pnand %p1859_p10, %p1858_p8 }
 0x2f4   : > { %1317 = dma.done.wait (!%p1085_p0), %s965_s26, 256  }
 0x2f5   : > { %1319 = vsyncadd (!%p1085_p0), %s965_s26, 4294967040  ;;  %p16_p2 = scmp.ge.s32.totalorder %s1426_s18, 4   ;;  %s1860_s12 = smov %s1326_s13 }
 0x2f6   : > { %s1861_s13 = smov %s1330_s14  ;;  %s1862_s14 = smov %s1438_s21 }
 0x2f7   : > { %s1863_s15 = smov %s1426_s18  ;;  %18 = sbr.rel (!%p16_p2) target bundleno = 5 (0x5), region = 77 }
 0x2fe   :  { %970 = vsyncpa [#allocation4], 1 }
 0x2ff   :  { %972 = vsyncpa [#allocation4 + $0x1], 1 }
 0x300   :  { %973 = vsyncpa [#allocation5], 1 }
 0x301   :  { %975 = vsyncpa [#allocation5 + $0x1], 1 }

</bundles_post_ra>
